<compile_context>
chip_gen: v7x
topology: tpu7x:2x2x1
jax: 0.10.0
libtpu: 0.0.40
codegen_flags: <defaults>
</compile_context>

<pallas_src>
import jax
import jax.numpy as jnp
from jax.experimental import pallas as pl
from jax.experimental.pallas import tpu as pltpu

F32 = jnp.float32

# ------------------------- hyper-parameters (small) -------------------------
LATENT_DIM = 16
NET_LMAX = 1                      # irreps_in = 4x0e + 4x1e  (lmax = 1)
C_IN = 4
CH_INITIAL = 8                    # do_initial_linear_projection = True
CH_SIZE_LIST = [8, 4]             # n_cg_blocks = 2
BOTTLENECK_HIDDEN = [32]
BATCH = 2
IS_VAE = True
LEARN_FRAME = True
USE_SKIP = True
GS_EPS = 1e-8                     # reference default is 0.0; tiny eps avoids NaN frames


# ------------------------------ fused kernel ---------------------------------
def _h_vae_kernel(
    # data
    x0_ref, x1_ref, eps_ref,
    # initial SO(3) projection (weights pre-transposed to (Cin, Cout))
    ip_w0_ref, ip_w1_ref,
    # encoder CG blocks
    e1_w0_ref, e1_w1_ref, e2_w0_ref, e2_w1_ref,
    # encoder bottleneck + mean / logvar
    eb_w_ref, eb_b_ref, em_w_ref, em_b_ref, ev_w_ref, ev_b_ref,
    # frame learner (two output channels stored as row vectors)
    fl_wx_ref, fl_wp_ref,
    # decoder bottleneck (two chained Linears, ReLU after the second)
    db1_w_ref, db1_b_ref, db2_w_ref, db2_b_ref,
    # first decoder projection, decoder CG blocks, final projection
    fd_w_ref, d1_w0_ref, d1_w1_ref, d2_w0_ref, d2_w1_ref, fp_w0_ref, fp_w1_ref,
    # outputs
    loss_ref, rec0_ref, rec1_ref, zstats_ref,
):
    dot = lambda a, b: jnp.dot(a, b, preferred_element_type=jnp.float32)

    x0 = x0_ref[...]                              # (B, Cin)     l=0 (m squeezed)
    x1 = [x1_ref[m] for m in range(3)]            # 3 x (B, Cin) l=1, per-m tiles
    B = x0.shape[0]
    C = x0.shape[1]

    # ---------------------------- encoder ----------------------------
    h0 = dot(x0, ip_w0_ref[...])                              # (B, 8)
    h1 = [dot(xm, ip_w1_ref[...]) for xm in x1]               # 3 x (B, 8)

    def cg_block(h0, h1, w0, w1):
        # simplified CGBlock: per-l channel mix + invariant-gated nonlinearity
        l0 = dot(h0, w0)
        l1 = [dot(hm, w1) for hm in h1]
        gate = jax.nn.sigmoid(l0)
        return jnp.maximum(l0, 0.0), [lm * gate for lm in l1]

    def skip_add(h0, h1, t0, t1):
        # additive skip with channel crop / zero-pad (channels = lane axis)
        c_h, c_t = h0.shape[1], t0.shape[1]
        if c_h == c_t:
            s0, s1 = h0, h1
        elif c_h > c_t:
            s0 = h0[:, :c_t]
            s1 = [hm[:, :c_t] for hm in h1]
        else:
            pad = jnp.zeros((h0.shape[0], c_t - c_h), jnp.float32)
            s0 = jnp.concatenate([h0, pad], axis=1)
            s1 = [jnp.concatenate([hm, pad], axis=1) for hm in h1]
        return t0 + s0, [tm + sm for tm, sm in zip(t1, s1)]

    t0, t1 = cg_block(h0, h1, e1_w0_ref[...], e1_w1_ref[...])   # 8 -> 8
    h0, h1 = skip_add(h0, h1, t0, t1)
    t0, t1 = cg_block(h0, h1, e2_w0_ref[...], e2_w1_ref[...])   # 8 -> 4
    h0, h1 = skip_add(h0, h1, t0, t1)

    enc_l1 = h1                                                 # last l=1 values

    # bottleneck (Linear + ReLU), then fused mean / logvar heads
    inv = jnp.maximum(dot(h0, eb_w_ref[...]) + eb_b_ref[...], 0.0)   # (B, 32)
    z_mean = dot(inv, em_w_ref[...]) + em_b_ref[...]                 # (B, 16)
    z_logv = dot(inv, ev_w_ref[...]) + ev_b_ref[...]                 # (B, 16)
    zstats_ref[...] = jnp.concatenate([z_mean, z_logv], axis=1)      # (B, 32) packed

    # learned frame: 4x1e -> 2x1e (VPU row-dot), then Gram-Schmidt in per-m form
    fwx = fl_wx_ref[...]                                             # (1, 4)
    fwp = fl_wp_ref[...]                                             # (1, 4)
    fx = [jnp.sum(hm * fwx, axis=1, keepdims=True) for hm in enc_l1]  # 3 x (B,1)
    fp = [jnp.sum(hm * fwp, axis=1, keepdims=True) for hm in enc_l1]  # 3 x (B,1)
    x_dot_p = fx[0] * fp[0] + fx[1] * fp[1] + fx[2] * fp[2]
    x_dot_x = fx[0] * fx[0] + fx[1] * fx[1] + fx[2] * fx[2]
    coef = x_dot_p / (x_dot_x + GS_EPS)
    fy = [fp[m] - coef * fx[m] for m in range(3)]
    fz = [fx[1] * fy[2] - fx[2] * fy[1],
          fx[2] * fy[0] - fx[0] * fy[2],
          fx[0] * fy[1] - fx[1] * fy[0]]

    def _normalize(v):
        n = jnp.sqrt(v[0] * v[0] + v[1] * v[1] + v[2] * v[2]) + GS_EPS
        return [vm / n for vm in v]

    fx, fy, fz = _normalize(fx), _normalize(fy), _normalize(fz)
    # frame as 3x1e features: per-m channel row [x, y, z] -> (B, 3)
    frame = [jnp.concatenate([fx[m], fy[m], fz[m]], axis=1) for m in range(3)]

    # ------------------------ reparameterization ------------------------
    z = z_mean + jnp.exp(0.5 * z_logv) * eps_ref[...]                # (B, 16)

    # ---------------------------- decoder ----------------------------
    t = dot(z, db1_w_ref[...]) + db1_b_ref[...]                      # (B, 32)
    h0 = jnp.maximum(dot(t, db2_w_ref[...]) + db2_b_ref[...], 0.0)   # (B, 4)
    h1 = [dot(fm, fd_w_ref[...]) for fm in frame]                    # 3 x (B, 4)

    t0, t1 = cg_block(h0, h1, d1_w0_ref[...], d1_w1_ref[...])        # 4 -> 8
    h0, h1 = skip_add(h0, h1, t0, t1)                                # pad 4 -> 8
    t0, t1 = cg_block(h0, h1, d2_w0_ref[...], d2_w1_ref[...])        # 8 -> 8
    h0, h1 = skip_add(h0, h1, t0, t1)

    rec0 = dot(h0, fp_w0_ref[...])                                   # (B, 4)
    rec1 = [dot(hm, fp_w1_ref[...]) for hm in h1]                    # 3 x (B, 4)
    rec0_ref[...] = rec0
    for m in range(3):
        rec1_ref[m] = rec1[m]

    # ----------------------------- losses -----------------------------
    d0 = rec0 - x0
    sse = jnp.sum(jnp.sum(d0 * d0, axis=1, keepdims=True), axis=0, keepdims=True)
    for m in range(3):
        dm = rec1[m] - x1[m]
        sse = sse + jnp.sum(jnp.sum(dm * dm, axis=1, keepdims=True),
                            axis=0, keepdims=True)
    total_elems = float(B * (C + 3 * C))                             # B * 16
    rec_loss = sse * (1.0 / total_elems)                             # (1, 1)

    kterm = -0.5 * jnp.sum(1.0 + z_logv - z_mean * z_mean - jnp.exp(z_logv),
                           axis=1, keepdims=True)                    # (B, 1)
    kl = jnp.sum(kterm, axis=0, keepdims=True) * (1.0 / (B * LATENT_DIM))

    loss_ref[...] = jnp.concatenate([rec_loss, kl], axis=1)          # (1, 2) packed


# ------------------------------ parameter init -------------------------------
def init_params(key):
    """Flat ordered list of weights matching the kernel argument order.
    Dense weights are pre-transposed to (in, out); biases pre-shaped (1, out)."""
    ks = iter(jax.random.split(key, 64))

    def w(out_dim, in_dim):
        m = jax.random.normal(next(ks), (out_dim, in_dim), F32)
        return jnp.transpose(m / jnp.sqrt(jnp.asarray(in_dim, F32)))

    def wrow(in_dim):
        m = jax.random.normal(next(ks), (1, in_dim), F32)
        return m / jnp.sqrt(jnp.asarray(in_dim, F32))

    def b(n):
        return jnp.zeros((1, n), F32)

    fe = CH_SIZE_LIST[-1]   # final encoder invariants / l1 channels = 4
    return [
        # initial SO(3) projection: Cin -> 8, per l
        w(CH_INITIAL, C_IN), w(CH_INITIAL, C_IN),
        # encoder CG blocks: 8 -> 8 -> 4
        w(CH_SIZE_LIST[0], CH_INITIAL), w(CH_SIZE_LIST[0], CH_INITIAL),
        w(CH_SIZE_LIST[1], CH_SIZE_LIST[0]), w(CH_SIZE_LIST[1], CH_SIZE_LIST[0]),
        # encoder bottleneck (Linear+ReLU), mean, logvar
        w(BOTTLENECK_HIDDEN[0], fe), b(BOTTLENECK_HIDDEN[0]),
        w(LATENT_DIM, BOTTLENECK_HIDDEN[0]), b(LATENT_DIM),
        w(LATENT_DIM, BOTTLENECK_HIDDEN[0]), b(LATENT_DIM),
        # frame learner 4x1e -> 2x1e (two output channels, stored as rows)
        wrow(fe), wrow(fe),
        # decoder bottleneck: latent -> 32 -> 4 (ReLU after hidden)
        w(BOTTLENECK_HIDDEN[0], LATENT_DIM), b(BOTTLENECK_HIDDEN[0]),
        w(fe, BOTTLENECK_HIDDEN[0]), b(fe),
        # first decoder projection 3x1e -> 4x1e
        w(fe, 3),
        # decoder CG blocks: 4 -> 8 -> 8
        w(CH_SIZE_LIST[0], fe), w(CH_SIZE_LIST[0], fe),
        w(CH_INITIAL, CH_SIZE_LIST[0]), w(CH_INITIAL, CH_SIZE_LIST[0]),
        # final SO(3) projection 8 -> Cin
        w(C_IN, CH_INITIAL), w(C_IN, CH_INITIAL),
    ]


# --------------------------------- forward ----------------------------------
def _full_spec(shape):
    nd = len(shape)
    return pl.BlockSpec(shape, lambda i, _nd=nd: (0,) * _nd)


def h_vae_forward(params, x, eps_key):
    # layout plumbing only (one-time, tiny): l=1 -> (3, B, C), l=0 -> (B, C)
    x0 = x[0][:, :, 0].astype(F32)                      # (B, C)
    x1 = jnp.transpose(x[1], (2, 0, 1)).astype(F32)     # (3, B, C)
    eps = jax.random.normal(eps_key, (BATCH, LATENT_DIM), F32)

    inputs = [x0, x1, eps] + list(params)

    out_shapes = (
        jax.ShapeDtypeStruct((1, 2), F32),               # [rec_loss, kl]
        jax.ShapeDtypeStruct((BATCH, C_IN), F32),        # reconst l=0
        jax.ShapeDtypeStruct((3, BATCH, C_IN), F32),     # reconst l=1 (m-major)
        jax.ShapeDtypeStruct((BATCH, 2 * LATENT_DIM), F32),  # [mean | logvar]
    )

    loss, rec0, rec1, zstats = pl.pallas_call(
        _h_vae_kernel,
        grid=(1,),
        in_specs=[_full_spec(a.shape) for a in inputs],
        out_specs=tuple(_full_spec(s.shape) for s in out_shapes),
        out_shape=out_shapes,
        compiler_params=pltpu.CompilerParams(dimension_semantics=("arbitrary",)),
    )(*inputs)

    x_rec_loss = loss[0, 0]
    kl = loss[0, 1]
    x_reconst = {0: rec0[:, :, None],                    # (B, C, 1)
                 1: jnp.transpose(rec1, (1, 2, 0))}      # (B, C, 3)
    z_mean = zstats[:, :LATENT_DIM]
    z_log_var = zstats[:, LATENT_DIM:]
    return x_rec_loss, kl, x_reconst, (z_mean, z_log_var)


# ----------------------------------- main ------------------------------------
if __name__ == "__main__":
    key = jax.random.PRNGKey(0)
    k_x0, k_x1, k_params, k_eps = jax.random.split(key, 4)

    # input signal: irreps_in = 4x0e + 4x1e  ->  x = {0: (B,4,1), 1: (B,4,3)}
    x = {0: jax.random.normal(k_x0, (BATCH, C_IN, 1), F32),
         1: jax.random.normal(k_x1, (BATCH, C_IN, 3), F32)}
    params = init_params(k_params)

    forward = jax.jit(h_vae_forward)
    rec_loss, kl, x_reconst, (z_mean, z_log_var) = forward(params, x, k_eps)

    jax.block_until_ready(rec_loss)
    jax.block_until_ready(kl)
    jax.block_until_ready(x_reconst[0])
    jax.block_until_ready(x_reconst[1])
    jax.block_until_ready(z_mean)
    jax.block_until_ready(z_log_var)

    assert x_reconst[0].shape == (BATCH, C_IN, 1)
    assert x_reconst[1].shape == (BATCH, C_IN, 3)
    assert z_mean.shape == (BATCH, LATENT_DIM)
    assert z_log_var.shape == (BATCH, LATENT_DIM)
    assert bool(jnp.isfinite(rec_loss)) and bool(jnp.isfinite(kl))
    print("KERNEL_OK")
</pallas_src>

<mosaic_0001>
module attributes {stable_mosaic.version = 11 : i64} {
  func.func @_h_vae_kernel(%arg0: i32, %arg1: memref<2x4xf32, #tpu.memory_space<vmem>>, %arg2: memref<3x2x4xf32, #tpu.memory_space<vmem>>, %arg3: memref<2x16xf32, #tpu.memory_space<vmem>>, %arg4: memref<4x8xf32, #tpu.memory_space<vmem>>, %arg5: memref<4x8xf32, #tpu.memory_space<vmem>>, %arg6: memref<8x8xf32, #tpu.memory_space<vmem>>, %arg7: memref<8x8xf32, #tpu.memory_space<vmem>>, %arg8: memref<8x4xf32, #tpu.memory_space<vmem>>, %arg9: memref<8x4xf32, #tpu.memory_space<vmem>>, %arg10: memref<4x32xf32, #tpu.memory_space<vmem>>, %arg11: memref<1x32xf32, #tpu.memory_space<vmem>>, %arg12: memref<32x16xf32, #tpu.memory_space<vmem>>, %arg13: memref<1x16xf32, #tpu.memory_space<vmem>>, %arg14: memref<32x16xf32, #tpu.memory_space<vmem>>, %arg15: memref<1x16xf32, #tpu.memory_space<vmem>>, %arg16: memref<1x4xf32, #tpu.memory_space<vmem>>, %arg17: memref<1x4xf32, #tpu.memory_space<vmem>>, %arg18: memref<16x32xf32, #tpu.memory_space<vmem>>, %arg19: memref<1x32xf32, #tpu.memory_space<vmem>>, %arg20: memref<32x4xf32, #tpu.memory_space<vmem>>, %arg21: memref<1x4xf32, #tpu.memory_space<vmem>>, %arg22: memref<3x4xf32, #tpu.memory_space<vmem>>, %arg23: memref<4x8xf32, #tpu.memory_space<vmem>>, %arg24: memref<4x8xf32, #tpu.memory_space<vmem>>, %arg25: memref<8x8xf32, #tpu.memory_space<vmem>>, %arg26: memref<8x8xf32, #tpu.memory_space<vmem>>, %arg27: memref<8x4xf32, #tpu.memory_space<vmem>>, %arg28: memref<8x4xf32, #tpu.memory_space<vmem>>, %arg29: memref<1x2xf32, #tpu.memory_space<vmem>>, %arg30: memref<2x4xf32, #tpu.memory_space<vmem>>, %arg31: memref<3x2x4xf32, #tpu.memory_space<vmem>>, %arg32: memref<2x32xf32, #tpu.memory_space<vmem>>) attributes {dimension_semantics = [#tpu.dimension_semantics<arbitrary>], iteration_bounds = array<i64: 1>, scalar_prefetch = 0 : i64, scratch_operands = 0 : i64, tpu.core_type = #tpu.core_type<tc>, window_params = [{pipeline_mode = #tpu.pipeline_mode<synchronous>, transform_indices = @transform_0, window_bounds = array<i64: 2, 4>}, {pipeline_mode = #tpu.pipeline_mode<synchronous>, transform_indices = @transform_1, window_bounds = array<i64: 3, 2, 4>}, {pipeline_mode = #tpu.pipeline_mode<synchronous>, transform_indices = @transform_2, window_bounds = array<i64: 2, 16>}, {pipeline_mode = #tpu.pipeline_mode<synchronous>, transform_indices = @transform_3, window_bounds = array<i64: 4, 8>}, {pipeline_mode = #tpu.pipeline_mode<synchronous>, transform_indices = @transform_4, window_bounds = array<i64: 4, 8>}, {pipeline_mode = #tpu.pipeline_mode<synchronous>, transform_indices = @transform_5, window_bounds = array<i64: 8, 8>}, {pipeline_mode = #tpu.pipeline_mode<synchronous>, transform_indices = @transform_6, window_bounds = array<i64: 8, 8>}, {pipeline_mode = #tpu.pipeline_mode<synchronous>, transform_indices = @transform_7, window_bounds = array<i64: 8, 4>}, {pipeline_mode = #tpu.pipeline_mode<synchronous>, transform_indices = @transform_8, window_bounds = array<i64: 8, 4>}, {pipeline_mode = #tpu.pipeline_mode<synchronous>, transform_indices = @transform_9, window_bounds = array<i64: 4, 32>}, {pipeline_mode = #tpu.pipeline_mode<synchronous>, transform_indices = @transform_10, window_bounds = array<i64: 1, 32>}, {pipeline_mode = #tpu.pipeline_mode<synchronous>, transform_indices = @transform_11, window_bounds = array<i64: 32, 16>}, {pipeline_mode = #tpu.pipeline_mode<synchronous>, transform_indices = @transform_12, window_bounds = array<i64: 1, 16>}, {pipeline_mode = #tpu.pipeline_mode<synchronous>, transform_indices = @transform_13, window_bounds = array<i64: 32, 16>}, {pipeline_mode = #tpu.pipeline_mode<synchronous>, transform_indices = @transform_14, window_bounds = array<i64: 1, 16>}, {pipeline_mode = #tpu.pipeline_mode<synchronous>, transform_indices = @transform_15, window_bounds = array<i64: 1, 4>}, {pipeline_mode = #tpu.pipeline_mode<synchronous>, transform_indices = @transform_16, window_bounds = array<i64: 1, 4>}, {pipeline_mode = #tpu.pipeline_mode<synchronous>, transform_indices = @transform_17, window_bounds = array<i64: 16, 32>}, {pipeline_mode = #tpu.pipeline_mode<synchronous>, transform_indices = @transform_18, window_bounds = array<i64: 1, 32>}, {pipeline_mode = #tpu.pipeline_mode<synchronous>, transform_indices = @transform_19, window_bounds = array<i64: 32, 4>}, {pipeline_mode = #tpu.pipeline_mode<synchronous>, transform_indices = @transform_20, window_bounds = array<i64: 1, 4>}, {pipeline_mode = #tpu.pipeline_mode<synchronous>, transform_indices = @transform_21, window_bounds = array<i64: 3, 4>}, {pipeline_mode = #tpu.pipeline_mode<synchronous>, transform_indices = @transform_22, window_bounds = array<i64: 4, 8>}, {pipeline_mode = #tpu.pipeline_mode<synchronous>, transform_indices = @transform_23, window_bounds = array<i64: 4, 8>}, {pipeline_mode = #tpu.pipeline_mode<synchronous>, transform_indices = @transform_24, window_bounds = array<i64: 8, 8>}, {pipeline_mode = #tpu.pipeline_mode<synchronous>, transform_indices = @transform_25, window_bounds = array<i64: 8, 8>}, {pipeline_mode = #tpu.pipeline_mode<synchronous>, transform_indices = @transform_26, window_bounds = array<i64: 8, 4>}, {pipeline_mode = #tpu.pipeline_mode<synchronous>, transform_indices = @transform_27, window_bounds = array<i64: 8, 4>}, {pipeline_mode = #tpu.pipeline_mode<synchronous>, transform_indices = @transform_28, window_bounds = array<i64: 1, 2>}, {pipeline_mode = #tpu.pipeline_mode<synchronous>, transform_indices = @transform_29, window_bounds = array<i64: 2, 4>}, {pipeline_mode = #tpu.pipeline_mode<synchronous>, transform_indices = @transform_30, window_bounds = array<i64: 3, 2, 4>}, {pipeline_mode = #tpu.pipeline_mode<synchronous>, transform_indices = @transform_31, window_bounds = array<i64: 2, 32>}]} {
    %c0 = arith.constant 0 : index
    %c0_0 = arith.constant 0 : index
    %0 = vector.load %arg1[%c0, %c0_0] : memref<2x4xf32, #tpu.memory_space<vmem>>, vector<2x4xf32>
    %c0_1 = arith.constant 0 : index
    %c0_2 = arith.constant 0 : index
    %c0_3 = arith.constant 0 : index
    %1 = vector.load %arg2[%c0_1, %c0_2, %c0_3] : memref<3x2x4xf32, #tpu.memory_space<vmem>>, vector<1x2x4xf32>
    %2 = vector.shape_cast %1 : vector<1x2x4xf32> to vector<2x4xf32>
    %c1 = arith.constant 1 : index
    %c0_4 = arith.constant 0 : index
    %c0_5 = arith.constant 0 : index
    %3 = vector.load %arg2[%c1, %c0_4, %c0_5] : memref<3x2x4xf32, #tpu.memory_space<vmem>>, vector<1x2x4xf32>
    %4 = vector.shape_cast %3 : vector<1x2x4xf32> to vector<2x4xf32>
    %c2 = arith.constant 2 : index
    %c0_6 = arith.constant 0 : index
    %c0_7 = arith.constant 0 : index
    %5 = vector.load %arg2[%c2, %c0_6, %c0_7] : memref<3x2x4xf32, #tpu.memory_space<vmem>>, vector<1x2x4xf32>
    %6 = vector.shape_cast %5 : vector<1x2x4xf32> to vector<2x4xf32>
    %c0_8 = arith.constant 0 : index
    %c0_9 = arith.constant 0 : index
    %7 = vector.load %arg4[%c0_8, %c0_9] : memref<4x8xf32, #tpu.memory_space<vmem>>, vector<4x8xf32>
    %cst = arith.constant dense<0.000000e+00> : vector<2x8xf32>
    %8 = tpu.matmul %0, %7, %cst {dimension_numbers = #tpu.dot_dimension_numbers<[1], [0], [0], [1], [0, 0, 1, 1], [], []>} : vector<2x4xf32>, vector<4x8xf32>, vector<2x8xf32> -> vector<2x8xf32>
    %c0_10 = arith.constant 0 : index
    %c0_11 = arith.constant 0 : index
    %9 = vector.load %arg5[%c0_10, %c0_11] : memref<4x8xf32, #tpu.memory_space<vmem>>, vector<4x8xf32>
    %cst_12 = arith.constant dense<0.000000e+00> : vector<2x8xf32>
    %10 = tpu.matmul %2, %9, %cst_12 {dimension_numbers = #tpu.dot_dimension_numbers<[1], [0], [0], [1], [0, 0, 1, 1], [], []>} : vector<2x4xf32>, vector<4x8xf32>, vector<2x8xf32> -> vector<2x8xf32>
    %c0_13 = arith.constant 0 : index
    %c0_14 = arith.constant 0 : index
    %11 = vector.load %arg5[%c0_13, %c0_14] : memref<4x8xf32, #tpu.memory_space<vmem>>, vector<4x8xf32>
    %cst_15 = arith.constant dense<0.000000e+00> : vector<2x8xf32>
    %12 = tpu.matmul %4, %11, %cst_15 {dimension_numbers = #tpu.dot_dimension_numbers<[1], [0], [0], [1], [0, 0, 1, 1], [], []>} : vector<2x4xf32>, vector<4x8xf32>, vector<2x8xf32> -> vector<2x8xf32>
    %c0_16 = arith.constant 0 : index
    %c0_17 = arith.constant 0 : index
    %13 = vector.load %arg5[%c0_16, %c0_17] : memref<4x8xf32, #tpu.memory_space<vmem>>, vector<4x8xf32>
    %cst_18 = arith.constant dense<0.000000e+00> : vector<2x8xf32>
    %14 = tpu.matmul %6, %13, %cst_18 {dimension_numbers = #tpu.dot_dimension_numbers<[1], [0], [0], [1], [0, 0, 1, 1], [], []>} : vector<2x4xf32>, vector<4x8xf32>, vector<2x8xf32> -> vector<2x8xf32>
    %c0_19 = arith.constant 0 : index
    %c0_20 = arith.constant 0 : index
    %15 = vector.load %arg6[%c0_19, %c0_20] : memref<8x8xf32, #tpu.memory_space<vmem>>, vector<8x8xf32>
    %c0_21 = arith.constant 0 : index
    %c0_22 = arith.constant 0 : index
    %16 = vector.load %arg7[%c0_21, %c0_22] : memref<8x8xf32, #tpu.memory_space<vmem>>, vector<8x8xf32>
    %cst_23 = arith.constant dense<0.000000e+00> : vector<2x8xf32>
    %17 = tpu.matmul %8, %15, %cst_23 {dimension_numbers = #tpu.dot_dimension_numbers<[1], [0], [0], [1], [0, 0, 1, 1], [], []>} : vector<2x8xf32>, vector<8x8xf32>, vector<2x8xf32> -> vector<2x8xf32>
    %cst_24 = arith.constant dense<0.000000e+00> : vector<2x8xf32>
    %18 = tpu.matmul %10, %16, %cst_24 {dimension_numbers = #tpu.dot_dimension_numbers<[1], [0], [0], [1], [0, 0, 1, 1], [], []>} : vector<2x8xf32>, vector<8x8xf32>, vector<2x8xf32> -> vector<2x8xf32>
    %cst_25 = arith.constant dense<0.000000e+00> : vector<2x8xf32>
    %19 = tpu.matmul %12, %16, %cst_25 {dimension_numbers = #tpu.dot_dimension_numbers<[1], [0], [0], [1], [0, 0, 1, 1], [], []>} : vector<2x8xf32>, vector<8x8xf32>, vector<2x8xf32> -> vector<2x8xf32>
    %cst_26 = arith.constant dense<0.000000e+00> : vector<2x8xf32>
    %20 = tpu.matmul %14, %16, %cst_26 {dimension_numbers = #tpu.dot_dimension_numbers<[1], [0], [0], [1], [0, 0, 1, 1], [], []>} : vector<2x8xf32>, vector<8x8xf32>, vector<2x8xf32> -> vector<2x8xf32>
    %21 = arith.negf %17 : vector<2x8xf32>
    %22 = math.exp %21 : vector<2x8xf32>
    %cst_27 = arith.constant 1.000000e+00 : f32
    %23 = vector.broadcast %cst_27 : f32 to vector<2x8xf32>
    %24 = arith.addf %23, %22 : vector<2x8xf32>
    %25 = arith.divf %23, %24 : vector<2x8xf32>
    %cst_28 = arith.constant 0.000000e+00 : f32
    %26 = vector.broadcast %cst_28 : f32 to vector<2x8xf32>
    %27 = arith.maximumf %17, %26 : vector<2x8xf32>
    %28 = arith.mulf %18, %25 : vector<2x8xf32>
    %29 = arith.mulf %19, %25 : vector<2x8xf32>
    %30 = arith.mulf %20, %25 : vector<2x8xf32>
    %31 = arith.addf %27, %8 : vector<2x8xf32>
    %32 = arith.addf %28, %10 : vector<2x8xf32>
    %33 = arith.addf %29, %12 : vector<2x8xf32>
    %34 = arith.addf %30, %14 : vector<2x8xf32>
    %c0_29 = arith.constant 0 : index
    %c0_30 = arith.constant 0 : index
    %35 = vector.load %arg8[%c0_29, %c0_30] : memref<8x4xf32, #tpu.memory_space<vmem>>, vector<8x4xf32>
    %c0_31 = arith.constant 0 : index
    %c0_32 = arith.constant 0 : index
    %36 = vector.load %arg9[%c0_31, %c0_32] : memref<8x4xf32, #tpu.memory_space<vmem>>, vector<8x4xf32>
    %cst_33 = arith.constant dense<0.000000e+00> : vector<2x4xf32>
    %37 = tpu.matmul %31, %35, %cst_33 {dimension_numbers = #tpu.dot_dimension_numbers<[1], [0], [0], [1], [0, 0, 1, 1], [], []>} : vector<2x8xf32>, vector<8x4xf32>, vector<2x4xf32> -> vector<2x4xf32>
    %cst_34 = arith.constant dense<0.000000e+00> : vector<2x4xf32>
    %38 = tpu.matmul %32, %36, %cst_34 {dimension_numbers = #tpu.dot_dimension_numbers<[1], [0], [0], [1], [0, 0, 1, 1], [], []>} : vector<2x8xf32>, vector<8x4xf32>, vector<2x4xf32> -> vector<2x4xf32>
    %cst_35 = arith.constant dense<0.000000e+00> : vector<2x4xf32>
    %39 = tpu.matmul %33, %36, %cst_35 {dimension_numbers = #tpu.dot_dimension_numbers<[1], [0], [0], [1], [0, 0, 1, 1], [], []>} : vector<2x8xf32>, vector<8x4xf32>, vector<2x4xf32> -> vector<2x4xf32>
    %cst_36 = arith.constant dense<0.000000e+00> : vector<2x4xf32>
    %40 = tpu.matmul %34, %36, %cst_36 {dimension_numbers = #tpu.dot_dimension_numbers<[1], [0], [0], [1], [0, 0, 1, 1], [], []>} : vector<2x8xf32>, vector<8x4xf32>, vector<2x4xf32> -> vector<2x4xf32>
    %41 = arith.negf %37 : vector<2x4xf32>
    %42 = math.exp %41 : vector<2x4xf32>
    %cst_37 = arith.constant 1.000000e+00 : f32
    %43 = vector.broadcast %cst_37 : f32 to vector<2x4xf32>
    %44 = arith.addf %43, %42 : vector<2x4xf32>
    %45 = arith.divf %43, %44 : vector<2x4xf32>
    %cst_38 = arith.constant 0.000000e+00 : f32
    %46 = vector.broadcast %cst_38 : f32 to vector<2x4xf32>
    %47 = arith.maximumf %37, %46 : vector<2x4xf32>
    %48 = arith.mulf %38, %45 : vector<2x4xf32>
    %49 = arith.mulf %39, %45 : vector<2x4xf32>
    %50 = arith.mulf %40, %45 : vector<2x4xf32>
    %51 = vector.extract_strided_slice %31 {offsets = [0, 0], sizes = [2, 4], strides = [1, 1]} : vector<2x8xf32> to vector<2x4xf32>
    %52 = vector.extract_strided_slice %32 {offsets = [0, 0], sizes = [2, 4], strides = [1, 1]} : vector<2x8xf32> to vector<2x4xf32>
    %53 = vector.extract_strided_slice %33 {offsets = [0, 0], sizes = [2, 4], strides = [1, 1]} : vector<2x8xf32> to vector<2x4xf32>
    %54 = vector.extract_strided_slice %34 {offsets = [0, 0], sizes = [2, 4], strides = [1, 1]} : vector<2x8xf32> to vector<2x4xf32>
    %55 = arith.addf %47, %51 : vector<2x4xf32>
    %56 = arith.addf %48, %52 : vector<2x4xf32>
    %57 = arith.addf %49, %53 : vector<2x4xf32>
    %58 = arith.addf %50, %54 : vector<2x4xf32>
    %c0_39 = arith.constant 0 : index
    %c0_40 = arith.constant 0 : index
    %59 = vector.load %arg10[%c0_39, %c0_40] : memref<4x32xf32, #tpu.memory_space<vmem>>, vector<4x32xf32>
    %cst_41 = arith.constant dense<0.000000e+00> : vector<2x32xf32>
    %60 = tpu.matmul %55, %59, %cst_41 {dimension_numbers = #tpu.dot_dimension_numbers<[1], [0], [0], [1], [0, 0, 1, 1], [], []>} : vector<2x4xf32>, vector<4x32xf32>, vector<2x32xf32> -> vector<2x32xf32>
    %c0_42 = arith.constant 0 : index
    %c0_43 = arith.constant 0 : index
    %61 = vector.load %arg11[%c0_42, %c0_43] : memref<1x32xf32, #tpu.memory_space<vmem>>, vector<1x32xf32>
    %62 = vector.broadcast %61 : vector<1x32xf32> to vector<2x32xf32>
    %63 = arith.addf %60, %62 : vector<2x32xf32>
    %cst_44 = arith.constant 0.000000e+00 : f32
    %64 = vector.broadcast %cst_44 : f32 to vector<2x32xf32>
    %65 = arith.maximumf %63, %64 : vector<2x32xf32>
    %c0_45 = arith.constant 0 : index
    %c0_46 = arith.constant 0 : index
    %66 = vector.load %arg12[%c0_45, %c0_46] : memref<32x16xf32, #tpu.memory_space<vmem>>, vector<32x16xf32>
    %cst_47 = arith.constant dense<0.000000e+00> : vector<2x16xf32>
    %67 = tpu.matmul %65, %66, %cst_47 {dimension_numbers = #tpu.dot_dimension_numbers<[1], [0], [0], [1], [0, 0, 1, 1], [], []>} : vector<2x32xf32>, vector<32x16xf32>, vector<2x16xf32> -> vector<2x16xf32>
    %c0_48 = arith.constant 0 : index
    %c0_49 = arith.constant 0 : index
    %68 = vector.load %arg13[%c0_48, %c0_49] : memref<1x16xf32, #tpu.memory_space<vmem>>, vector<1x16xf32>
    %69 = vector.broadcast %68 : vector<1x16xf32> to vector<2x16xf32>
    %70 = arith.addf %67, %69 : vector<2x16xf32>
    %c0_50 = arith.constant 0 : index
    %c0_51 = arith.constant 0 : index
    %71 = vector.load %arg14[%c0_50, %c0_51] : memref<32x16xf32, #tpu.memory_space<vmem>>, vector<32x16xf32>
    %cst_52 = arith.constant dense<0.000000e+00> : vector<2x16xf32>
    %72 = tpu.matmul %65, %71, %cst_52 {dimension_numbers = #tpu.dot_dimension_numbers<[1], [0], [0], [1], [0, 0, 1, 1], [], []>} : vector<2x32xf32>, vector<32x16xf32>, vector<2x16xf32> -> vector<2x16xf32>
    %c0_53 = arith.constant 0 : index
    %c0_54 = arith.constant 0 : index
    %73 = vector.load %arg15[%c0_53, %c0_54] : memref<1x16xf32, #tpu.memory_space<vmem>>, vector<1x16xf32>
    %74 = vector.broadcast %73 : vector<1x16xf32> to vector<2x16xf32>
    %75 = arith.addf %72, %74 : vector<2x16xf32>
    %76 = tpu.concatenate %70, %75 in 1 : vector<2x16xf32>, vector<2x16xf32> -> vector<2x32xf32>
    %c0_55 = arith.constant 0 : index
    %c0_56 = arith.constant 0 : index
    %77 = vector.load %arg32[%c0_55, %c0_56] : memref<2x32xf32, #tpu.memory_space<vmem>>, vector<2x32xf32>
    tpu.vector_store %arg32[%c0_55, %c0_56], %76 {strides = array<i32>} : memref<2x32xf32, #tpu.memory_space<vmem>>, vector<2x32xf32>,
    %c0_57 = arith.constant 0 : index
    %c0_58 = arith.constant 0 : index
    %78 = vector.load %arg16[%c0_57, %c0_58] : memref<1x4xf32, #tpu.memory_space<vmem>>, vector<1x4xf32>
    %c0_59 = arith.constant 0 : index
    %c0_60 = arith.constant 0 : index
    %79 = vector.load %arg17[%c0_59, %c0_60] : memref<1x4xf32, #tpu.memory_space<vmem>>, vector<1x4xf32>
    %80 = vector.broadcast %78 : vector<1x4xf32> to vector<2x4xf32>
    %81 = arith.mulf %56, %80 : vector<2x4xf32>
    %cst_61 = arith.constant dense<0.000000e+00> : vector<2xf32>
    %82 = vector.multi_reduction <add>, %81, %cst_61 [1] : vector<2x4xf32> to vector<2xf32>
    %83 = vector.shape_cast %82 : vector<2xf32> to vector<2x1xf32>
    %84 = vector.broadcast %78 : vector<1x4xf32> to vector<2x4xf32>
    %85 = arith.mulf %57, %84 : vector<2x4xf32>
    %cst_62 = arith.constant dense<0.000000e+00> : vector<2xf32>
    %86 = vector.multi_reduction <add>, %85, %cst_62 [1] : vector<2x4xf32> to vector<2xf32>
    %87 = vector.shape_cast %86 : vector<2xf32> to vector<2x1xf32>
    %88 = vector.broadcast %78 : vector<1x4xf32> to vector<2x4xf32>
    %89 = arith.mulf %58, %88 : vector<2x4xf32>
    %cst_63 = arith.constant dense<0.000000e+00> : vector<2xf32>
    %90 = vector.multi_reduction <add>, %89, %cst_63 [1] : vector<2x4xf32> to vector<2xf32>
    %91 = vector.shape_cast %90 : vector<2xf32> to vector<2x1xf32>
    %92 = vector.broadcast %79 : vector<1x4xf32> to vector<2x4xf32>
    %93 = arith.mulf %56, %92 : vector<2x4xf32>
    %cst_64 = arith.constant dense<0.000000e+00> : vector<2xf32>
    %94 = vector.multi_reduction <add>, %93, %cst_64 [1] : vector<2x4xf32> to vector<2xf32>
    %95 = vector.shape_cast %94 : vector<2xf32> to vector<2x1xf32>
    %96 = vector.broadcast %79 : vector<1x4xf32> to vector<2x4xf32>
    %97 = arith.mulf %57, %96 : vector<2x4xf32>
    %cst_65 = arith.constant dense<0.000000e+00> : vector<2xf32>
    %98 = vector.multi_reduction <add>, %97, %cst_65 [1] : vector<2x4xf32> to vector<2xf32>
    %99 = vector.shape_cast %98 : vector<2xf32> to vector<2x1xf32>
    %100 = vector.broadcast %79 : vector<1x4xf32> to vector<2x4xf32>
    %101 = arith.mulf %58, %100 : vector<2x4xf32>
    %cst_66 = arith.constant dense<0.000000e+00> : vector<2xf32>
    %102 = vector.multi_reduction <add>, %101, %cst_66 [1] : vector<2x4xf32> to vector<2xf32>
    %103 = vector.shape_cast %102 : vector<2xf32> to vector<2x1xf32>
    %104 = arith.mulf %83, %95 : vector<2x1xf32>
    %105 = arith.mulf %87, %99 : vector<2x1xf32>
    %106 = arith.addf %104, %105 : vector<2x1xf32>
    %107 = arith.mulf %91, %103 : vector<2x1xf32>
    %108 = arith.addf %106, %107 : vector<2x1xf32>
    %109 = arith.mulf %83, %83 : vector<2x1xf32>
    %110 = arith.mulf %87, %87 : vector<2x1xf32>
    %111 = arith.addf %109, %110 : vector<2x1xf32>
    %112 = arith.mulf %91, %91 : vector<2x1xf32>
    %113 = arith.addf %111, %112 : vector<2x1xf32>
    %cst_67 = arith.constant 9.99999993E-9 : f32
    %114 = vector.broadcast %cst_67 : f32 to vector<2x1xf32>
    %115 = arith.addf %113, %114 : vector<2x1xf32>
    %116 = arith.divf %108, %115 : vector<2x1xf32>
    %117 = arith.mulf %116, %83 : vector<2x1xf32>
    %118 = arith.subf %95, %117 : vector<2x1xf32>
    %119 = arith.mulf %116, %87 : vector<2x1xf32>
    %120 = arith.subf %99, %119 : vector<2x1xf32>
    %121 = arith.mulf %116, %91 : vector<2x1xf32>
    %122 = arith.subf %103, %121 : vector<2x1xf32>
    %123 = arith.mulf %87, %122 : vector<2x1xf32>
    %124 = arith.mulf %91, %120 : vector<2x1xf32>
    %125 = arith.subf %123, %124 : vector<2x1xf32>
    %126 = arith.mulf %91, %118 : vector<2x1xf32>
    %127 = arith.mulf %83, %122 : vector<2x1xf32>
    %128 = arith.subf %126, %127 : vector<2x1xf32>
    %129 = arith.mulf %83, %120 : vector<2x1xf32>
    %130 = arith.mulf %87, %118 : vector<2x1xf32>
    %131 = arith.subf %129, %130 : vector<2x1xf32>
    %132 = arith.mulf %83, %83 : vector<2x1xf32>
    %133 = arith.mulf %87, %87 : vector<2x1xf32>
    %134 = arith.addf %132, %133 : vector<2x1xf32>
    %135 = arith.mulf %91, %91 : vector<2x1xf32>
    %136 = arith.addf %134, %135 : vector<2x1xf32>
    %137 = math.sqrt %136 : vector<2x1xf32>
    %cst_68 = arith.constant 9.99999993E-9 : f32
    %138 = vector.broadcast %cst_68 : f32 to vector<2x1xf32>
    %139 = arith.addf %137, %138 : vector<2x1xf32>
    %140 = arith.divf %83, %139 : vector<2x1xf32>
    %141 = arith.divf %87, %139 : vector<2x1xf32>
    %142 = arith.divf %91, %139 : vector<2x1xf32>
    %143 = arith.mulf %118, %118 : vector<2x1xf32>
    %144 = arith.mulf %120, %120 : vector<2x1xf32>
    %145 = arith.addf %143, %144 : vector<2x1xf32>
    %146 = arith.mulf %122, %122 : vector<2x1xf32>
    %147 = arith.addf %145, %146 : vector<2x1xf32>
    %148 = math.sqrt %147 : vector<2x1xf32>
    %cst_69 = arith.constant 9.99999993E-9 : f32
    %149 = vector.broadcast %cst_69 : f32 to vector<2x1xf32>
    %150 = arith.addf %148, %149 : vector<2x1xf32>
    %151 = arith.divf %118, %150 : vector<2x1xf32>
    %152 = arith.divf %120, %150 : vector<2x1xf32>
    %153 = arith.divf %122, %150 : vector<2x1xf32>
    %154 = arith.mulf %125, %125 : vector<2x1xf32>
    %155 = arith.mulf %128, %128 : vector<2x1xf32>
    %156 = arith.addf %154, %155 : vector<2x1xf32>
    %157 = arith.mulf %131, %131 : vector<2x1xf32>
    %158 = arith.addf %156, %157 : vector<2x1xf32>
    %159 = math.sqrt %158 : vector<2x1xf32>
    %cst_70 = arith.constant 9.99999993E-9 : f32
    %160 = vector.broadcast %cst_70 : f32 to vector<2x1xf32>
    %161 = arith.addf %159, %160 : vector<2x1xf32>
    %162 = arith.divf %125, %161 : vector<2x1xf32>
    %163 = arith.divf %128, %161 : vector<2x1xf32>
    %164 = arith.divf %131, %161 : vector<2x1xf32>
    %165 = tpu.concatenate %140, %151, %162 in 1 : vector<2x1xf32>, vector<2x1xf32>, vector<2x1xf32> -> vector<2x3xf32>
    %166 = tpu.concatenate %141, %152, %163 in 1 : vector<2x1xf32>, vector<2x1xf32>, vector<2x1xf32> -> vector<2x3xf32>
    %167 = tpu.concatenate %142, %153, %164 in 1 : vector<2x1xf32>, vector<2x1xf32>, vector<2x1xf32> -> vector<2x3xf32>
    %cst_71 = arith.constant 5.000000e-01 : f32
    %168 = vector.broadcast %cst_71 : f32 to vector<2x16xf32>
    %169 = arith.mulf %168, %75 : vector<2x16xf32>
    %170 = math.exp %169 : vector<2x16xf32>
    %c0_72 = arith.constant 0 : index
    %c0_73 = arith.constant 0 : index
    %171 = vector.load %arg3[%c0_72, %c0_73] : memref<2x16xf32, #tpu.memory_space<vmem>>, vector<2x16xf32>
    %172 = arith.mulf %170, %171 : vector<2x16xf32>
    %173 = arith.addf %70, %172 : vector<2x16xf32>
    %c0_74 = arith.constant 0 : index
    %c0_75 = arith.constant 0 : index
    %174 = vector.load %arg18[%c0_74, %c0_75] : memref<16x32xf32, #tpu.memory_space<vmem>>, vector<16x32xf32>
    %cst_76 = arith.constant dense<0.000000e+00> : vector<2x32xf32>
    %175 = tpu.matmul %173, %174, %cst_76 {dimension_numbers = #tpu.dot_dimension_numbers<[1], [0], [0], [1], [0, 0, 1, 1], [], []>} : vector<2x16xf32>, vector<16x32xf32>, vector<2x32xf32> -> vector<2x32xf32>
    %c0_77 = arith.constant 0 : index
    %c0_78 = arith.constant 0 : index
    %176 = vector.load %arg19[%c0_77, %c0_78] : memref<1x32xf32, #tpu.memory_space<vmem>>, vector<1x32xf32>
    %177 = vector.broadcast %176 : vector<1x32xf32> to vector<2x32xf32>
    %178 = arith.addf %175, %177 : vector<2x32xf32>
    %c0_79 = arith.constant 0 : index
    %c0_80 = arith.constant 0 : index
    %179 = vector.load %arg20[%c0_79, %c0_80] : memref<32x4xf32, #tpu.memory_space<vmem>>, vector<32x4xf32>
    %cst_81 = arith.constant dense<0.000000e+00> : vector<2x4xf32>
    %180 = tpu.matmul %178, %179, %cst_81 {dimension_numbers = #tpu.dot_dimension_numbers<[1], [0], [0], [1], [0, 0, 1, 1], [], []>} : vector<2x32xf32>, vector<32x4xf32>, vector<2x4xf32> -> vector<2x4xf32>
    %c0_82 = arith.constant 0 : index
    %c0_83 = arith.constant 0 : index
    %181 = vector.load %arg21[%c0_82, %c0_83] : memref<1x4xf32, #tpu.memory_space<vmem>>, vector<1x4xf32>
    %182 = vector.broadcast %181 : vector<1x4xf32> to vector<2x4xf32>
    %183 = arith.addf %180, %182 : vector<2x4xf32>
    %cst_84 = arith.constant 0.000000e+00 : f32
    %184 = vector.broadcast %cst_84 : f32 to vector<2x4xf32>
    %185 = arith.maximumf %183, %184 : vector<2x4xf32>
    %c0_85 = arith.constant 0 : index
    %c0_86 = arith.constant 0 : index
    %186 = vector.load %arg22[%c0_85, %c0_86] : memref<3x4xf32, #tpu.memory_space<vmem>>, vector<3x4xf32>
    %cst_87 = arith.constant dense<0.000000e+00> : vector<2x4xf32>
    %187 = tpu.matmul %165, %186, %cst_87 {dimension_numbers = #tpu.dot_dimension_numbers<[1], [0], [0], [1], [0, 0, 1, 1], [], []>} : vector<2x3xf32>, vector<3x4xf32>, vector<2x4xf32> -> vector<2x4xf32>
    %c0_88 = arith.constant 0 : index
    %c0_89 = arith.constant 0 : index
    %188 = vector.load %arg22[%c0_88, %c0_89] : memref<3x4xf32, #tpu.memory_space<vmem>>, vector<3x4xf32>
    %cst_90 = arith.constant dense<0.000000e+00> : vector<2x4xf32>
    %189 = tpu.matmul %166, %188, %cst_90 {dimension_numbers = #tpu.dot_dimension_numbers<[1], [0], [0], [1], [0, 0, 1, 1], [], []>} : vector<2x3xf32>, vector<3x4xf32>, vector<2x4xf32> -> vector<2x4xf32>
    %c0_91 = arith.constant 0 : index
    %c0_92 = arith.constant 0 : index
    %190 = vector.load %arg22[%c0_91, %c0_92] : memref<3x4xf32, #tpu.memory_space<vmem>>, vector<3x4xf32>
    %cst_93 = arith.constant dense<0.000000e+00> : vector<2x4xf32>
    %191 = tpu.matmul %167, %190, %cst_93 {dimension_numbers = #tpu.dot_dimension_numbers<[1], [0], [0], [1], [0, 0, 1, 1], [], []>} : vector<2x3xf32>, vector<3x4xf32>, vector<2x4xf32> -> vector<2x4xf32>
    %c0_94 = arith.constant 0 : index
    %c0_95 = arith.constant 0 : index
    %192 = vector.load %arg23[%c0_94, %c0_95] : memref<4x8xf32, #tpu.memory_space<vmem>>, vector<4x8xf32>
    %c0_96 = arith.constant 0 : index
    %c0_97 = arith.constant 0 : index
    %193 = vector.load %arg24[%c0_96, %c0_97] : memref<4x8xf32, #tpu.memory_space<vmem>>, vector<4x8xf32>
    %cst_98 = arith.constant dense<0.000000e+00> : vector<2x8xf32>
    %194 = tpu.matmul %185, %192, %cst_98 {dimension_numbers = #tpu.dot_dimension_numbers<[1], [0], [0], [1], [0, 0, 1, 1], [], []>} : vector<2x4xf32>, vector<4x8xf32>, vector<2x8xf32> -> vector<2x8xf32>
    %cst_99 = arith.constant dense<0.000000e+00> : vector<2x8xf32>
    %195 = tpu.matmul %187, %193, %cst_99 {dimension_numbers = #tpu.dot_dimension_numbers<[1], [0], [0], [1], [0, 0, 1, 1], [], []>} : vector<2x4xf32>, vector<4x8xf32>, vector<2x8xf32> -> vector<2x8xf32>
    %cst_100 = arith.constant dense<0.000000e+00> : vector<2x8xf32>
    %196 = tpu.matmul %189, %193, %cst_100 {dimension_numbers = #tpu.dot_dimension_numbers<[1], [0], [0], [1], [0, 0, 1, 1], [], []>} : vector<2x4xf32>, vector<4x8xf32>, vector<2x8xf32> -> vector<2x8xf32>
    %cst_101 = arith.constant dense<0.000000e+00> : vector<2x8xf32>
    %197 = tpu.matmul %191, %193, %cst_101 {dimension_numbers = #tpu.dot_dimension_numbers<[1], [0], [0], [1], [0, 0, 1, 1], [], []>} : vector<2x4xf32>, vector<4x8xf32>, vector<2x8xf32> -> vector<2x8xf32>
    %198 = arith.negf %194 : vector<2x8xf32>
    %199 = math.exp %198 : vector<2x8xf32>
    %cst_102 = arith.constant 1.000000e+00 : f32
    %200 = vector.broadcast %cst_102 : f32 to vector<2x8xf32>
    %201 = arith.addf %200, %199 : vector<2x8xf32>
    %202 = arith.divf %200, %201 : vector<2x8xf32>
    %cst_103 = arith.constant 0.000000e+00 : f32
    %203 = vector.broadcast %cst_103 : f32 to vector<2x8xf32>
    %204 = arith.maximumf %194, %203 : vector<2x8xf32>
    %205 = arith.mulf %195, %202 : vector<2x8xf32>
    %206 = arith.mulf %196, %202 : vector<2x8xf32>
    %207 = arith.mulf %197, %202 : vector<2x8xf32>
    %cst_104 = arith.constant 0.000000e+00 : f32
    %208 = vector.broadcast %cst_104 : f32 to vector<2x4xf32>
    %209 = tpu.concatenate %185, %208 in 1 : vector<2x4xf32>, vector<2x4xf32> -> vector<2x8xf32>
    %210 = tpu.concatenate %187, %208 in 1 : vector<2x4xf32>, vector<2x4xf32> -> vector<2x8xf32>
    %211 = tpu.concatenate %189, %208 in 1 : vector<2x4xf32>, vector<2x4xf32> -> vector<2x8xf32>
    %212 = tpu.concatenate %191, %208 in 1 : vector<2x4xf32>, vector<2x4xf32> -> vector<2x8xf32>
    %213 = arith.addf %204, %209 : vector<2x8xf32>
    %214 = arith.addf %205, %210 : vector<2x8xf32>
    %215 = arith.addf %206, %211 : vector<2x8xf32>
    %216 = arith.addf %207, %212 : vector<2x8xf32>
    %c0_105 = arith.constant 0 : index
    %c0_106 = arith.constant 0 : index
    %217 = vector.load %arg25[%c0_105, %c0_106] : memref<8x8xf32, #tpu.memory_space<vmem>>, vector<8x8xf32>
    %c0_107 = arith.constant 0 : index
    %c0_108 = arith.constant 0 : index
    %218 = vector.load %arg26[%c0_107, %c0_108] : memref<8x8xf32, #tpu.memory_space<vmem>>, vector<8x8xf32>
    %cst_109 = arith.constant dense<0.000000e+00> : vector<2x8xf32>
    %219 = tpu.matmul %213, %217, %cst_109 {dimension_numbers = #tpu.dot_dimension_numbers<[1], [0], [0], [1], [0, 0, 1, 1], [], []>} : vector<2x8xf32>, vector<8x8xf32>, vector<2x8xf32> -> vector<2x8xf32>
    %cst_110 = arith.constant dense<0.000000e+00> : vector<2x8xf32>
    %220 = tpu.matmul %214, %218, %cst_110 {dimension_numbers = #tpu.dot_dimension_numbers<[1], [0], [0], [1], [0, 0, 1, 1], [], []>} : vector<2x8xf32>, vector<8x8xf32>, vector<2x8xf32> -> vector<2x8xf32>
    %cst_111 = arith.constant dense<0.000000e+00> : vector<2x8xf32>
    %221 = tpu.matmul %215, %218, %cst_111 {dimension_numbers = #tpu.dot_dimension_numbers<[1], [0], [0], [1], [0, 0, 1, 1], [], []>} : vector<2x8xf32>, vector<8x8xf32>, vector<2x8xf32> -> vector<2x8xf32>
    %cst_112 = arith.constant dense<0.000000e+00> : vector<2x8xf32>
    %222 = tpu.matmul %216, %218, %cst_112 {dimension_numbers = #tpu.dot_dimension_numbers<[1], [0], [0], [1], [0, 0, 1, 1], [], []>} : vector<2x8xf32>, vector<8x8xf32>, vector<2x8xf32> -> vector<2x8xf32>
    %223 = arith.negf %219 : vector<2x8xf32>
    %224 = math.exp %223 : vector<2x8xf32>
    %cst_113 = arith.constant 1.000000e+00 : f32
    %225 = vector.broadcast %cst_113 : f32 to vector<2x8xf32>
    %226 = arith.addf %225, %224 : vector<2x8xf32>
    %227 = arith.divf %225, %226 : vector<2x8xf32>
    %cst_114 = arith.constant 0.000000e+00 : f32
    %228 = vector.broadcast %cst_114 : f32 to vector<2x8xf32>
    %229 = arith.maximumf %219, %228 : vector<2x8xf32>
    %230 = arith.mulf %220, %227 : vector<2x8xf32>
    %231 = arith.mulf %221, %227 : vector<2x8xf32>
    %232 = arith.mulf %222, %227 : vector<2x8xf32>
    %233 = arith.addf %229, %213 : vector<2x8xf32>
    %234 = arith.addf %230, %214 : vector<2x8xf32>
    %235 = arith.addf %231, %215 : vector<2x8xf32>
    %236 = arith.addf %232, %216 : vector<2x8xf32>
    %c0_115 = arith.constant 0 : index
    %c0_116 = arith.constant 0 : index
    %237 = vector.load %arg27[%c0_115, %c0_116] : memref<8x4xf32, #tpu.memory_space<vmem>>, vector<8x4xf32>
    %cst_117 = arith.constant dense<0.000000e+00> : vector<2x4xf32>
    %238 = tpu.matmul %233, %237, %cst_117 {dimension_numbers = #tpu.dot_dimension_numbers<[1], [0], [0], [1], [0, 0, 1, 1], [], []>} : vector<2x8xf32>, vector<8x4xf32>, vector<2x4xf32> -> vector<2x4xf32>
    %c0_118 = arith.constant 0 : index
    %c0_119 = arith.constant 0 : index
    %239 = vector.load %arg28[%c0_118, %c0_119] : memref<8x4xf32, #tpu.memory_space<vmem>>, vector<8x4xf32>
    %cst_120 = arith.constant dense<0.000000e+00> : vector<2x4xf32>
    %240 = tpu.matmul %234, %239, %cst_120 {dimension_numbers = #tpu.dot_dimension_numbers<[1], [0], [0], [1], [0, 0, 1, 1], [], []>} : vector<2x8xf32>, vector<8x4xf32>, vector<2x4xf32> -> vector<2x4xf32>
    %c0_121 = arith.constant 0 : index
    %c0_122 = arith.constant 0 : index
    %241 = vector.load %arg28[%c0_121, %c0_122] : memref<8x4xf32, #tpu.memory_space<vmem>>, vector<8x4xf32>
    %cst_123 = arith.constant dense<0.000000e+00> : vector<2x4xf32>
    %242 = tpu.matmul %235, %241, %cst_123 {dimension_numbers = #tpu.dot_dimension_numbers<[1], [0], [0], [1], [0, 0, 1, 1], [], []>} : vector<2x8xf32>, vector<8x4xf32>, vector<2x4xf32> -> vector<2x4xf32>
    %c0_124 = arith.constant 0 : index
    %c0_125 = arith.constant 0 : index
    %243 = vector.load %arg28[%c0_124, %c0_125] : memref<8x4xf32, #tpu.memory_space<vmem>>, vector<8x4xf32>
    %cst_126 = arith.constant dense<0.000000e+00> : vector<2x4xf32>
    %244 = tpu.matmul %236, %243, %cst_126 {dimension_numbers = #tpu.dot_dimension_numbers<[1], [0], [0], [1], [0, 0, 1, 1], [], []>} : vector<2x8xf32>, vector<8x4xf32>, vector<2x4xf32> -> vector<2x4xf32>
    %c0_127 = arith.constant 0 : index
    %c0_128 = arith.constant 0 : index
    %245 = vector.load %arg30[%c0_127, %c0_128] : memref<2x4xf32, #tpu.memory_space<vmem>>, vector<2x4xf32>
    tpu.vector_store %arg30[%c0_127, %c0_128], %238 {strides = array<i32>} : memref<2x4xf32, #tpu.memory_space<vmem>>, vector<2x4xf32>,
    %c0_129 = arith.constant 0 : index
    %c0_130 = arith.constant 0 : index
    %c0_131 = arith.constant 0 : index
    %246 = vector.load %arg31[%c0_129, %c0_130, %c0_131] : memref<3x2x4xf32, #tpu.memory_space<vmem>>, vector<1x2x4xf32>
    %247 = vector.shape_cast %246 : vector<1x2x4xf32> to vector<2x4xf32>
    %248 = vector.shape_cast %240 : vector<2x4xf32> to vector<1x2x4xf32>
    tpu.vector_store %arg31[%c0_129, %c0_130, %c0_131], %248 {strides = array<i32>} : memref<3x2x4xf32, #tpu.memory_space<vmem>>, vector<1x2x4xf32>,
    %c1_132 = arith.constant 1 : index
    %c0_133 = arith.constant 0 : index
    %c0_134 = arith.constant 0 : index
    %249 = vector.load %arg31[%c1_132, %c0_133, %c0_134] : memref<3x2x4xf32, #tpu.memory_space<vmem>>, vector<1x2x4xf32>
    %250 = vector.shape_cast %249 : vector<1x2x4xf32> to vector<2x4xf32>
    %251 = vector.shape_cast %242 : vector<2x4xf32> to vector<1x2x4xf32>
    tpu.vector_store %arg31[%c1_132, %c0_133, %c0_134], %251 {strides = array<i32>} : memref<3x2x4xf32, #tpu.memory_space<vmem>>, vector<1x2x4xf32>,
    %c2_135 = arith.constant 2 : index
    %c0_136 = arith.constant 0 : index
    %c0_137 = arith.constant 0 : index
    %252 = vector.load %arg31[%c2_135, %c0_136, %c0_137] : memref<3x2x4xf32, #tpu.memory_space<vmem>>, vector<1x2x4xf32>
    %253 = vector.shape_cast %252 : vector<1x2x4xf32> to vector<2x4xf32>
    %254 = vector.shape_cast %244 : vector<2x4xf32> to vector<1x2x4xf32>
    tpu.vector_store %arg31[%c2_135, %c0_136, %c0_137], %254 {strides = array<i32>} : memref<3x2x4xf32, #tpu.memory_space<vmem>>, vector<1x2x4xf32>,
    %255 = arith.subf %238, %0 : vector<2x4xf32>
    %256 = arith.mulf %255, %255 : vector<2x4xf32>
    %cst_138 = arith.constant dense<0.000000e+00> : vector<2xf32>
    %257 = vector.multi_reduction <add>, %256, %cst_138 [1] : vector<2x4xf32> to vector<2xf32>
    %258 = vector.shape_cast %257 : vector<2xf32> to vector<2x1xf32>
    %cst_139 = arith.constant dense<0.000000e+00> : vector<1xf32>
    %259 = vector.multi_reduction <add>, %258, %cst_139 [0] : vector<2x1xf32> to vector<1xf32>
    %260 = vector.shape_cast %259 : vector<1xf32> to vector<1x1xf32>
    %261 = arith.subf %240, %2 : vector<2x4xf32>
    %262 = arith.mulf %261, %261 : vector<2x4xf32>
    %cst_140 = arith.constant dense<0.000000e+00> : vector<2xf32>
    %263 = vector.multi_reduction <add>, %262, %cst_140 [1] : vector<2x4xf32> to vector<2xf32>
    %264 = vector.shape_cast %263 : vector<2xf32> to vector<2x1xf32>
    %cst_141 = arith.constant dense<0.000000e+00> : vector<1xf32>
    %265 = vector.multi_reduction <add>, %264, %cst_141 [0] : vector<2x1xf32> to vector<1xf32>
    %266 = vector.shape_cast %265 : vector<1xf32> to vector<1x1xf32>
    %267 = arith.addf %260, %266 : vector<1x1xf32>
    %268 = arith.subf %242, %4 : vector<2x4xf32>
    %269 = arith.mulf %268, %268 : vector<2x4xf32>
    %cst_142 = arith.constant dense<0.000000e+00> : vector<2xf32>
    %270 = vector.multi_reduction <add>, %269, %cst_142 [1] : vector<2x4xf32> to vector<2xf32>
    %271 = vector.shape_cast %270 : vector<2xf32> to vector<2x1xf32>
    %cst_143 = arith.constant dense<0.000000e+00> : vector<1xf32>
    %272 = vector.multi_reduction <add>, %271, %cst_143 [0] : vector<2x1xf32> to vector<1xf32>
    %273 = vector.shape_cast %272 : vector<1xf32> to vector<1x1xf32>
    %274 = arith.addf %267, %273 : vector<1x1xf32>
    %275 = arith.subf %244, %6 : vector<2x4xf32>
    %276 = arith.mulf %275, %275 : vector<2x4xf32>
    %cst_144 = arith.constant dense<0.000000e+00> : vector<2xf32>
    %277 = vector.multi_reduction <add>, %276, %cst_144 [1] : vector<2x4xf32> to vector<2xf32>
    %278 = vector.shape_cast %277 : vector<2xf32> to vector<2x1xf32>
    %cst_145 = arith.constant dense<0.000000e+00> : vector<1xf32>
    %279 = vector.multi_reduction <add>, %278, %cst_145 [0] : vector<2x1xf32> to vector<1xf32>
    %280 = vector.shape_cast %279 : vector<1xf32> to vector<1x1xf32>
    %281 = arith.addf %274, %280 : vector<1x1xf32>
    %cst_146 = arith.constant 3.125000e-02 : f32
    %282 = vector.broadcast %cst_146 : f32 to vector<1x1xf32>
    %283 = arith.mulf %281, %282 : vector<1x1xf32>
    %cst_147 = arith.constant 1.000000e+00 : f32
    %284 = vector.broadcast %cst_147 : f32 to vector<2x16xf32>
    %285 = arith.addf %284, %75 : vector<2x16xf32>
    %286 = arith.mulf %70, %70 : vector<2x16xf32>
    %287 = arith.subf %285, %286 : vector<2x16xf32>
    %288 = math.exp %75 : vector<2x16xf32>
    %289 = arith.subf %287, %288 : vector<2x16xf32>
    %cst_148 = arith.constant dense<0.000000e+00> : vector<2xf32>
    %290 = vector.multi_reduction <add>, %289, %cst_148 [1] : vector<2x16xf32> to vector<2xf32>
    %291 = vector.shape_cast %290 : vector<2xf32> to vector<2x1xf32>
    %cst_149 = arith.constant -5.000000e-01 : f32
    %292 = vector.broadcast %cst_149 : f32 to vector<2x1xf32>
    %293 = arith.mulf %292, %291 : vector<2x1xf32>
    %cst_150 = arith.constant dense<0.000000e+00> : vector<1xf32>
    %294 = vector.multi_reduction <add>, %293, %cst_150 [0] : vector<2x1xf32> to vector<1xf32>
    %295 = vector.shape_cast %294 : vector<1xf32> to vector<1x1xf32>
    %cst_151 = arith.constant 3.125000e-02 : f32
    %296 = vector.broadcast %cst_151 : f32 to vector<1x1xf32>
    %297 = arith.mulf %295, %296 : vector<1x1xf32>
    %298 = tpu.concatenate %283, %297 in 1 : vector<1x1xf32>, vector<1x1xf32> -> vector<1x2xf32>
    %c0_152 = arith.constant 0 : index
    %c0_153 = arith.constant 0 : index
    %299 = vector.load %arg29[%c0_152, %c0_153] : memref<1x2xf32, #tpu.memory_space<vmem>>, vector<1x2xf32>
    tpu.vector_store %arg29[%c0_152, %c0_153], %298 {strides = array<i32>} : memref<1x2xf32, #tpu.memory_space<vmem>>, vector<1x2xf32>,
    return
  }
  func.func @transform_0(%arg0: i32) -> (i32, i32) {
    %c0_i32 = arith.constant 0 : i32
    %c0_i32_0 = arith.constant 0 : i32
    %c0_i32_1 = arith.constant 0 : i32
    return %c0_i32, %c0_i32_0 : i32, i32
  }
  func.func @transform_1(%arg0: i32) -> (i32, i32, i32) {
    %c0_i32 = arith.constant 0 : i32
    %c0_i32_0 = arith.constant 0 : i32
    %c0_i32_1 = arith.constant 0 : i32
    %c0_i32_2 = arith.constant 0 : i32
    return %c0_i32, %c0_i32_0, %c0_i32_1 : i32, i32, i32
  }
  func.func @transform_2(%arg0: i32) -> (i32, i32) {
    %c0_i32 = arith.constant 0 : i32
    %c0_i32_0 = arith.constant 0 : i32
    %c0_i32_1 = arith.constant 0 : i32
    return %c0_i32, %c0_i32_0 : i32, i32
  }
  func.func @transform_3(%arg0: i32) -> (i32, i32) {
    %c0_i32 = arith.constant 0 : i32
    %c0_i32_0 = arith.constant 0 : i32
    %c0_i32_1 = arith.constant 0 : i32
    return %c0_i32, %c0_i32_0 : i32, i32
  }
  func.func @transform_4(%arg0: i32) -> (i32, i32) {
    %c0_i32 = arith.constant 0 : i32
    %c0_i32_0 = arith.constant 0 : i32
    %c0_i32_1 = arith.constant 0 : i32
    return %c0_i32, %c0_i32_0 : i32, i32
  }
  func.func @transform_5(%arg0: i32) -> (i32, i32) {
    %c0_i32 = arith.constant 0 : i32
    %c0_i32_0 = arith.constant 0 : i32
    %c0_i32_1 = arith.constant 0 : i32
    return %c0_i32, %c0_i32_0 : i32, i32
  }
  func.func @transform_6(%arg0: i32) -> (i32, i32) {
    %c0_i32 = arith.constant 0 : i32
    %c0_i32_0 = arith.constant 0 : i32
    %c0_i32_1 = arith.constant 0 : i32
    return %c0_i32, %c0_i32_0 : i32, i32
  }
  func.func @transform_7(%arg0: i32) -> (i32, i32) {
    %c0_i32 = arith.constant 0 : i32
    %c0_i32_0 = arith.constant 0 : i32
    %c0_i32_1 = arith.constant 0 : i32
    return %c0_i32, %c0_i32_0 : i32, i32
  }
  func.func @transform_8(%arg0: i32) -> (i32, i32) {
    %c0_i32 = arith.constant 0 : i32
    %c0_i32_0 = arith.constant 0 : i32
    %c0_i32_1 = arith.constant 0 : i32
    return %c0_i32, %c0_i32_0 : i32, i32
  }
  func.func @transform_9(%arg0: i32) -> (i32, i32) {
    %c0_i32 = arith.constant 0 : i32
    %c0_i32_0 = arith.constant 0 : i32
    %c0_i32_1 = arith.constant 0 : i32
    return %c0_i32, %c0_i32_0 : i32, i32
  }
  func.func @transform_10(%arg0: i32) -> (i32, i32) {
    %c0_i32 = arith.constant 0 : i32
    %c0_i32_0 = arith.constant 0 : i32
    %c0_i32_1 = arith.constant 0 : i32
    return %c0_i32, %c0_i32_0 : i32, i32
  }
  func.func @transform_11(%arg0: i32) -> (i32, i32) {
    %c0_i32 = arith.constant 0 : i32
    %c0_i32_0 = arith.constant 0 : i32
    %c0_i32_1 = arith.constant 0 : i32
    return %c0_i32, %c0_i32_0 : i32, i32
  }
  func.func @transform_12(%arg0: i32) -> (i32, i32) {
    %c0_i32 = arith.constant 0 : i32
    %c0_i32_0 = arith.constant 0 : i32
    %c0_i32_1 = arith.constant 0 : i32
    return %c0_i32, %c0_i32_0 : i32, i32
  }
  func.func @transform_13(%arg0: i32) -> (i32, i32) {
    %c0_i32 = arith.constant 0 : i32
    %c0_i32_0 = arith.constant 0 : i32
    %c0_i32_1 = arith.constant 0 : i32
    return %c0_i32, %c0_i32_0 : i32, i32
  }
  func.func @transform_14(%arg0: i32) -> (i32, i32) {
    %c0_i32 = arith.constant 0 : i32
    %c0_i32_0 = arith.constant 0 : i32
    %c0_i32_1 = arith.constant 0 : i32
    return %c0_i32, %c0_i32_0 : i32, i32
  }
  func.func @transform_15(%arg0: i32) -> (i32, i32) {
    %c0_i32 = arith.constant 0 : i32
    %c0_i32_0 = arith.constant 0 : i32
    %c0_i32_1 = arith.constant 0 : i32
    return %c0_i32, %c0_i32_0 : i32, i32
  }
  func.func @transform_16(%arg0: i32) -> (i32, i32) {
    %c0_i32 = arith.constant 0 : i32
    %c0_i32_0 = arith.constant 0 : i32
    %c0_i32_1 = arith.constant 0 : i32
    return %c0_i32, %c0_i32_0 : i32, i32
  }
  func.func @transform_17(%arg0: i32) -> (i32, i32) {
    %c0_i32 = arith.constant 0 : i32
    %c0_i32_0 = arith.constant 0 : i32
    %c0_i32_1 = arith.constant 0 : i32
    return %c0_i32, %c0_i32_0 : i32, i32
  }
  func.func @transform_18(%arg0: i32) -> (i32, i32) {
    %c0_i32 = arith.constant 0 : i32
    %c0_i32_0 = arith.constant 0 : i32
    %c0_i32_1 = arith.constant 0 : i32
    return %c0_i32, %c0_i32_0 : i32, i32
  }
  func.func @transform_19(%arg0: i32) -> (i32, i32) {
    %c0_i32 = arith.constant 0 : i32
    %c0_i32_0 = arith.constant 0 : i32
    %c0_i32_1 = arith.constant 0 : i32
    return %c0_i32, %c0_i32_0 : i32, i32
  }
  func.func @transform_20(%arg0: i32) -> (i32, i32) {
    %c0_i32 = arith.constant 0 : i32
    %c0_i32_0 = arith.constant 0 : i32
    %c0_i32_1 = arith.constant 0 : i32
    return %c0_i32, %c0_i32_0 : i32, i32
  }
  func.func @transform_21(%arg0: i32) -> (i32, i32) {
    %c0_i32 = arith.constant 0 : i32
    %c0_i32_0 = arith.constant 0 : i32
    %c0_i32_1 = arith.constant 0 : i32
    return %c0_i32, %c0_i32_0 : i32, i32
  }
  func.func @transform_22(%arg0: i32) -> (i32, i32) {
    %c0_i32 = arith.constant 0 : i32
    %c0_i32_0 = arith.constant 0 : i32
    %c0_i32_1 = arith.constant 0 : i32
    return %c0_i32, %c0_i32_0 : i32, i32
  }
  func.func @transform_23(%arg0: i32) -> (i32, i32) {
    %c0_i32 = arith.constant 0 : i32
    %c0_i32_0 = arith.constant 0 : i32
    %c0_i32_1 = arith.constant 0 : i32
    return %c0_i32, %c0_i32_0 : i32, i32
  }
  func.func @transform_24(%arg0: i32) -> (i32, i32) {
    %c0_i32 = arith.constant 0 : i32
    %c0_i32_0 = arith.constant 0 : i32
    %c0_i32_1 = arith.constant 0 : i32
    return %c0_i32, %c0_i32_0 : i32, i32
  }
  func.func @transform_25(%arg0: i32) -> (i32, i32) {
    %c0_i32 = arith.constant 0 : i32
    %c0_i32_0 = arith.constant 0 : i32
    %c0_i32_1 = arith.constant 0 : i32
    return %c0_i32, %c0_i32_0 : i32, i32
  }
  func.func @transform_26(%arg0: i32) -> (i32, i32) {
    %c0_i32 = arith.constant 0 : i32
    %c0_i32_0 = arith.constant 0 : i32
    %c0_i32_1 = arith.constant 0 : i32
    return %c0_i32, %c0_i32_0 : i32, i32
  }
  func.func @transform_27(%arg0: i32) -> (i32, i32) {
    %c0_i32 = arith.constant 0 : i32
    %c0_i32_0 = arith.constant 0 : i32
    %c0_i32_1 = arith.constant 0 : i32
    return %c0_i32, %c0_i32_0 : i32, i32
  }
  func.func @transform_28(%arg0: i32) -> (i32, i32) {
    %c0_i32 = arith.constant 0 : i32
    %c0_i32_0 = arith.constant 0 : i32
    %c0_i32_1 = arith.constant 0 : i32
    return %c0_i32, %c0_i32_0 : i32, i32
  }
  func.func @transform_29(%arg0: i32) -> (i32, i32) {
    %c0_i32 = arith.constant 0 : i32
    %c0_i32_0 = arith.constant 0 : i32
    %c0_i32_1 = arith.constant 0 : i32
    return %c0_i32, %c0_i32_0 : i32, i32
  }
  func.func @transform_30(%arg0: i32) -> (i32, i32, i32) {
    %c0_i32 = arith.constant 0 : i32
    %c0_i32_0 = arith.constant 0 : i32
    %c0_i32_1 = arith.constant 0 : i32
    %c0_i32_2 = arith.constant 0 : i32
    return %c0_i32, %c0_i32_0, %c0_i32_1 : i32, i32, i32
  }
  func.func @transform_31(%arg0: i32) -> (i32, i32) {
    %c0_i32 = arith.constant 0 : i32
    %c0_i32_0 = arith.constant 0 : i32
    %c0_i32_1 = arith.constant 0 : i32
    return %c0_i32, %c0_i32_0 : i32, i32
  }
}

</mosaic_0001>

<bundles_post_ra>
// kernel: h_vae_forward.1
= control target key start
LH: loop header
LB: loop body
LE: loop exit
PB: predicated region body
PF: predicated region fallthrough
CT: control target
= control target key end

     0   :  { %s3353_s6 = smov 1   ;;  %s3354_s10 = smov 2   ;;  %s3870_s0 = inlined_call_operand.smem [shape: u32[32], index: -1, kind: input, shape index: {}] }
   0x1   :  { %s3400_s5 = sld [smem:[%s3870_s0]]   ;;  %s3355_s14 = smov 3  }
   0x2   :  { %s3405_s9 = sld [smem:[%s3870_s0 + %s3353_s6]]   ;;  %s3356_s18 = smov 4  }
   0x3   :  { %s3410_s13 = sld [smem:[%s3870_s0 + %s3354_s10]]   ;;  %s3357_s22 = smov 5  }
   0x4   :  { %s3415_s17 = sld [smem:[%s3870_s0 + %s3355_s14]]   ;;  %s3358_s26 = smov 6  }
   0x5   :  { %s3420_s21 = sld [smem:[%s3870_s0 + %s3356_s18]]   ;;  %s3359_s30 = smov 7  }
   0x6   :  { %s3425_s25 = sld [smem:[%s3870_s0 + %s3357_s22]]   ;;  %s3360_s4 = smov 8  }
   0x7   :  { %s3430_s29 = sld [smem:[%s3870_s0 + %s3358_s26]]   ;;  %s3361_s10 = smov 9  }
   0x8   :  { %s3435_s3 = sld [smem:[%s3870_s0 + %s3359_s30]]   ;;  %s3362_s15 = smov 10  }
   0x9   :  { %3873 = sst [smem:[#allocation8_spill]] %s3410_s13  ;;  %s3363_s20 = smov 11  }
   0xa   :  { %s3440_s8 = sld [smem:[%s3870_s0 + %s3360_s4]]   ;;  %s3364_s26 = smov 12  }
   0xb   :  { %s3445_s14 = sld [smem:[%s3870_s0 + %s3361_s10]]   ;;  %s3365_s1 = smov 13  }
   0xc   :  { %s3450_s19 = sld [smem:[%s3870_s0 + %s3362_s15]]   ;;  %s3366_s7 = smov 14  }
   0xd   :  { %s3455_s24 = sld [smem:[%s3870_s0 + %s3363_s20]]   ;;  %s3367_s15 = smov 15  }
   0xe   :  { %s3460_s30 = sld [smem:[%s3870_s0 + %s3364_s26]]   ;;  %s3368_s22 = smov 16  }
   0xf   :  { %s3465_s6 = sld [smem:[%s3870_s0 + %s3365_s1]]   ;;  %s3369_s28 = smov 17  }
  0x10   :  { %s3470_s12 = sld [smem:[%s3870_s0 + %s3366_s7]]   ;;  %s3370_s7 = smov 18  }
  0x11   :  { %s3475_s20 = sld [smem:[%s3870_s0 + %s3367_s15]]   ;;  %s3371_s15 = smov 19  }
  0x12   :  { %s3480_s27 = sld [smem:[%s3870_s0 + %s3368_s22]]   ;;  %s3372_s22 = smov 20  }
  0x13   :  { %s3485_s4 = sld [smem:[%s3870_s0 + %s3369_s28]]   ;;  %s3373_s28 = smov 21  }
  0x14   :  { %3874 = sst [smem:[#allocation9_spill]] %s3460_s30 }
  0x15   :  { %s3490_s13 = sld [smem:[%s3870_s0 + %s3370_s7]]   ;;  %s3374_s7 = smov 22  }
  0x16   :  { %3875 = sst [smem:[#allocation10_spill]] %s3470_s12 }
  0x17   :  { %s3495_s30 = sld [smem:[%s3870_s0 + %s3371_s15]]   ;;  %s3375_s15 = smov 23  }
  0x18   :  { %s3500_s12 = sld [smem:[%s3870_s0 + %s3372_s22]]   ;;  %s3376_s22 = smov 24  }
  0x19   :  { %3876 = sst [smem:[#allocation11_spill]] %s3485_s4 }
  0x1a   :  { %s3505_s4 = sld [smem:[%s3870_s0 + %s3373_s28]]   ;;  %s3377_s28 = smov 25  }
  0x1b   :  { %3877 = sst [smem:[#allocation12_spill]] %s3490_s13 }
  0x1c   :  { %s3510_s13 = sld [smem:[%s3870_s0 + %s3374_s7]]   ;;  %s3378_s7 = smov 26  }
  0x1d   :  { %3878 = sst [smem:[#allocation13_spill]] %s3495_s30 }
  0x1e   :  { %3879 = sst [smem:[#allocation14_spill]] %s3500_s12 }
  0x1f   :  { %s3515_s30 = sld [smem:[%s3870_s0 + %s3375_s15]]   ;;  %s3379_s15 = smov 27  }
  0x20   :  { %3880 = sst [smem:[#allocation15_spill]] %s3505_s4 }
  0x21   :  { %s3520_s12 = sld [smem:[%s3870_s0 + %s3376_s22]]   ;;  %s3380_s22 = smov 28  }
  0x22   :  { %3881 = sst [smem:[#allocation16_spill]] %s3510_s13 }
  0x23   :  { %s3525_s4 = sld [smem:[%s3870_s0 + %s3377_s28]]   ;;  %s3381_s28 = smov 29  }
  0x24   :  { %s3530_s13 = sld [smem:[%s3870_s0 + %s3378_s7]]   ;;  %s3382_s7 = smov 30  }
  0x25   :  { %3882 = sst [smem:[#allocation17_spill]] %s3515_s30 }
  0x26   :  { %s3535_s30 = sld [smem:[%s3870_s0 + %s3379_s15]]   ;;  %s3383_s15 = smov 31  }
  0x27   :  { %3883 = sst [smem:[#allocation18_spill]] %s3520_s12 }
  0x28   :  { %s3540_s12 = sld [smem:[%s3870_s0 + %s3380_s22]]  }
  0x29   :  { %3884 = sst [smem:[#allocation19_spill]] %s3525_s4 }
  0x2a   :  { %3885 = sst [smem:[#allocation20_spill]] %s3530_s13 }
  0x2b   :  { %s3545_s4 = sld [smem:[%s3870_s0 + %s3381_s28]]  }
  0x2c   :  { %3886 = sst [smem:[#allocation21_spill]] %s3535_s30 }
  0x2d   :  { %s3550_s13 = sld [smem:[%s3870_s0 + %s3382_s7]]  }
  0x2e   :  { %s3555_s30 = sld [smem:[%s3870_s0 + %s3383_s15]]  }
  0x2f   :  { %69 = vsyncpa [#allocation3], 0  ;;  %v133_v0 = vld [vmem:[%s3415_s17] sm:$0xf]  ;;  %vm138_vm0 = vcmask 1043456   ;;  %vm134_vm1 = vcmask 31744  }
  0x30   :  { %v3384_v1 = vmov 0.0   ;;  %vm3385_vm2 = vmmov 0   ;;  %v3562_v2 = vld [vmem:[%s3400_s5] sm:$0x3] }
  0x31   :  { %3031 = vmatprep.subr.mxu0 %v3384_v1  ;;  %3033 = vmatprep.mubr.msk.f32.mxu0 %vm3385_vm2, %v3384_v1  ;;  %v212_v3 = vld [vmem:[%s3420_s21] sm:$0xf] }
  0x32   :  { %3032 = vmatpush3.msk.msra.mxu0 %vm138_vm0, %v133_v0  ;;  %3036 = vmatprep.subr.mxu1 %v3384_v1  ;;  %v3568_v4 = vld [vmem:[%s3405_s9] sm:$0x3] }
  0x33   :  { %3034 = vmatmul.mubr.msk.f32.vlgmr.msra.gmra.mrb[0].mxu0 %vm134_vm1, %v3562_v2  ;;  %3037 = vmatpush3.msk.msra.mxu1 %vm138_vm0, %v212_v3 }
  0x34   :  { %70 = vsyncpa [#allocation5], 0  ;;  %3038 = vmatprep.mubr.msk.f32.mxu1 %vm3385_vm2, %v3384_v1  ;;  %3041 = vmatprep.subr.mxu0 %v3384_v1  ;;  %v3580_v5 = vld [vmem:[%s3405_s9 + $0x2] sm:$0x3]  ;;  %v3586_v6 = vld [vmem:[%s3405_s9 + $0x4] sm:$0x3] }
  0x35   :  { %3039 = vmatmul.mubr.msk.f32.vlgmr.msra.gmra.mrb[0].mxu1 %vm134_vm1, %v3568_v4  ;;  %3046 = vmatprep.subr.mxu1 %v3384_v1  ;;  %v435_v7 = vld [vmem:[%s3425_s25] sm:$0xff]  ;;  %vm437_vm3 = vcmask 64512   ;;  %vm1320_vm4 = vcmask 25600   ;;  %vm1148_vm7 = vcmask 261120   ;;  %s3887_s0 = sld [smem:[#allocation11_spill]]  ;;  %s3888_s5 = sld [smem:[#allocation13_spill]] }
  0x36   :  { %3042 = vmatpush3.msk.msra.mxu0 %vm138_vm0, %v212_v3  ;;  %3043 = vmatprep.mubr.msk.f32.mxu0 %vm3385_vm2, %v3384_v1  ;;  %v436_v8 = vld [vmem:[%s3430_s29] sm:$0xff]  ;;  %vm1424_vm12 = vcmask 7168   ;;  %s3889_s9 = sld [smem:[#allocation10_spill]]  ;;  %vm1426_vm13 = vcmask 15360   ;;  %s3890_s17 = sld [smem:[#allocation9_spill]]  ;;  %vm1307_vm14 = vcmask 130048  }
  0x37   :  { %3047 = vmatpush3.msk.msra.mxu1 %vm138_vm0, %v212_v3  ;;  %3048 = vmatprep.mubr.msk.f32.mxu1 %vm3385_vm2, %v3384_v1  ;;  %v744_v17 = vld [vmem:[%s3435_s3] sm:$0xff]  ;;  %s3891_s21 = sld [smem:[#allocation8_spill]]  ;;  %s3892_s25 = sld [smem:[#allocation15_spill]]  ;;  %vm1610_vm15 = vcmask 1042432  }
  0x38   :  { %3044 = vmatmul.mubr.msk.f32.vlgmr.msra.gmra.mrb[2].mxu0 %vm134_vm1, %v3580_v5  ;;  %3051 = vmatprep.subr.mxu0 %v3384_v1  ;;  %v745_v18 = vld [vmem:[%s3440_s8] sm:$0xff]  ;;  %s3893_s29 = sld [smem:[#allocation12_spill]]  ;;  %s3894_s3 = sld [smem:[#allocation17_spill]] }
  0x39   :  { %3049 = vmatmul.mubr.msk.f32.vlgmr.msra.gmra.mrb[2].mxu1 %vm134_vm1, %v3586_v6  ;;  %3052 = vmatpush3.msra.mxu0 %v435_v7  ;;  %v1052_v39 = vld [vmem:[%s3445_s14] sm:$0xf]  ;;  %s3895_s8 = sld [smem:[#allocation16_spill]]  ;;  %s3896_s14 = sld [smem:[#allocation14_spill]] }
  0x3a   :  { %3053 = vmatprep.mubr.msk.f32.mxu0 %vm3385_vm2, %v3384_v1  ;;  %3056 = vmatprep.subr.mxu1 %v3384_v1  ;;  %v2927_v54 = vld [vmem:[%s3475_s20] ss:$0 sm:$0xff]  ;;  %s3900_s20 = sld [smem:[#allocation21_spill]]  ;;  %s3388_s22 = smov [#allocation2]  }
  0x3b   :  { %3058 = vmatprep.mubr.msk.f32.mxu1 %vm3385_vm2, %v3384_v1  ;;  %3061 = vmatprep.subr.mxu0 %v3384_v1  ;;  %v2928_v0 = vld [vmem:[%s3480_s27] ss:$0 sm:$0xff]  ;;  %s3387_s27 = smov 16   ;;  %s2839_s23 = sshll.u32 %s3388_s22, 4  ;;  %s2840_s23 = int_to_ptr.vmem [resolvable:$true] %s2839_s23 }
  0x3c   :  { %3057 = vmatpush3.msra.mxu1 %v436_v8  ;;  %s3389_s26 = smov [#allocation4]   ;;  %s3305_s1 = scalar_lea.vmem %s2840_s23, 32 }
  0x3d   :  { %3066 = vmatprep.subr.mxu1 %v3384_v1  ;;  %s2848_s28 = sshll.u32 %s3389_s26, 4  ;;  %p3306_p0 = scmp.ne.s32.totalorder %s2840_s23, %s3305_s1  ;;  %s3845_s28 = int_to_ptr.vmem [resolvable:$true] %s2848_s28 }
  0x3e   :  { %p3310_p1 = scmp.lt.s32.totalorder %s2840_s23, %s2840_s23  ;;  %p3311_p2 = scmp.lt.s32.totalorder %s3305_s1, %s3305_s1 }
  0x40   :  { %p3312_p3 = por %p3311_p2, %p3310_p1 }
  0x42   :  { %p3313_p4 = pnand %p3312_p3, %p3306_p0 }
 0x106   :  { %v208_v9 = vpop.f32.mrb[0].mxu0 }
 0x107   :  { %v3035_v10 = vpop.f32.mrb[1].mxu0  ;;  %3054 = vmatmul.mubr.msk.f32.vlgmr.msra.gmra.mrb[4].mxu0 %vm437_vm3, %v208_v9 }
 0x108   :  { %v285_v11 = vpop.f32.mrb[0].mxu1  ;;  %3062 = vmatpush3.msra.mxu0 %v436_v8  ;;  %3063 = vmatprep.mubr.msk.f32.mxu0 %vm3385_vm2, %v3384_v1 }
 0x109   :  { %3059 = vmatmul.mubr.msk.f32.vlgmr.msra.gmra.mrb[4].mxu1 %vm437_vm3, %v285_v11  ;;  %v3040_v12 = vpop.f32.mrb[1].mxu1  ;;  %3071 = vmatprep.subr.mxu0 %v3384_v1 }
 0x10a   :  { %3067 = vmatpush3.msra.mxu1 %v436_v8  ;;  %3068 = vmatprep.mubr.msk.f32.mxu1 %vm3385_vm2, %v3384_v1 }
 0x10b   :  { %v358_v13 = vpop.f32.mrb[2].mxu0  ;;  %3076 = vmatprep.subr.mxu1 %v3384_v1 }
 0x10c   :  { %v431_v14 = vpop.f32.mrb[2].mxu1  ;;  %3064 = vmatmul.mubr.msk.f32.vlgmr.msra.gmra.mrb[6].mxu0 %vm437_vm3, %v358_v13  ;;  %v3045_v15 = vpop.f32.mrb[3].mxu0 }
 0x10d   :  { %3069 = vmatmul.mubr.msk.f32.vlgmr.msra.gmra.mrb[6].mxu1 %vm437_vm3, %v431_v14  ;;  %3073 = vmatprep.mubr.msk.f32.mxu0 %vm3385_vm2, %v3384_v1  ;;  %v3050_v16 = vpop.f32.mrb[3].mxu1  ;;  %v1137_v15 = vld [vmem:[%s3455_s24] sm:$0xff] }
 0x10e   :  { %3078 = vmatprep.mubr.msk.f32.mxu1 %vm3385_vm2, %v3384_v1  ;;  %3072 = vmatpush3.msra.mxu0 %v744_v17  ;;  %v1138_v16 = vld [vmem:[%s3455_s24 + $0x8] sm:$0xff]  ;;  %v1222_v17 = vld [vmem:[%s3465_s6] sm:$0xff] }
 0x10f   :  { %3081 = vmatprep.subr.mxu0 %v3384_v1  ;;  %3077 = vmatpush3.msra.mxu1 %v745_v18 }
 0x110   :  { %3086 = vmatprep.subr.mxu1 %v3384_v1 }
 0x1da   :  { %v507_v19 = vpop.f32.mrb[4].mxu0 }
 0x1db   :  { %v2914_v20 = vmul.f32 -1.442695, %v507_v19  ;;  %v736_v21 = vmax.f32 %v507_v19, 0.0  ;;  %v3055_v22 = vpop.f32.mrb[5].mxu0  ;;  %v1223_v19 = vld [vmem:[%s3465_s6 + $0x8] sm:$0xff] }
 0x1dc   :  { %v580_v23 = vpop.f32.mrb[4].mxu1  ;;  %v1139_v22 = vld [vmem:[%s3455_s24 + $0x10] sm:$0xff] }
 0x1dd   :  { %3271 = vpow2.f32 %v2914_v20  ;;  %v740_v24 = vadd.f32 %v736_v21, %v208_v9  ;;  %v3060_v25 = vpop.f32.mrb[5].mxu1  ;;  %v3386_v20 = vmov 0.0|0.0   ;;  %v3218_v21 = vpack.c.bf16 %v1223_v19, %v1222_v17 }
 0x1df   :  { %3074 = vmatmul.mubr.msk.f32.vlgmr.msra.gmra.mrb[8].mxu0 %vm437_vm3, %v740_v24  ;;  %v653_v26 = vpop.f32.mrb[6].mxu0 }
 0x1e0   :  { %v726_v27 = vpop.f32.mrb[6].mxu1  ;;  %3082 = vmatpush3.msra.mxu0 %v745_v18  ;;  %3083 = vmatprep.mubr.msk.f32.mxu0 %vm3385_vm2, %v3384_v1  ;;  %v3065_v28 = vpop.f32.mrb[7].mxu0 }
 0x1e1   :  { %3091 = vmatprep.subr.mxu0 %v3384_v1  ;;  %v3070_v29 = vpop.f32.mrb[7].mxu1 }
 0x1e7   :  { %v3272_v30 = vpop.eup %3271 }
 0x1e8   :  { %v733_v31 = vadd.f32 1.0, %v3272_v30 }
 0x1ea   :  { %3273 = vrcp.f32 %v733_v31 }
 0x1f4   :  { %v3274_v32 = vpop.eup %3273 }
 0x1f5   :  { %v737_v33 = vmul.f32 %v3274_v32, %v580_v23  ;;  %v738_v34 = vmul.f32 %v3274_v32, %v653_v26  ;;  %v739_v35 = vmul.f32 %v3274_v32, %v726_v27  ;;  %v1140_v23 = vld [vmem:[%s3455_s24 + $0x18] sm:$0xff]  ;;  %s3898_s24 = sld [smem:[#allocation19_spill]] }
 0x1f6   :  { %v3215_v25 = vpack.c.bf16 %v1140_v23, %v1139_v22  ;;  %v1225_v26 = vld [vmem:[%s3465_s6 + $0x18] sm:$0xff] }
 0x1f7   :  { %v741_v36 = vadd.f32 %v737_v33, %v285_v11  ;;  %v742_v37 = vadd.f32 %v738_v34, %v358_v13  ;;  %v743_v38 = vadd.f32 %v739_v35, %v431_v14 }
 0x1f9   :  { %3079 = vmatmul.mubr.msk.f32.vlgmr.msra.gmra.mrb[8].mxu1 %vm437_vm3, %v741_v36  ;;  %3084 = vmatmul.mubr.msk.f32.vlgmr.msra.gmra.mrb[10].mxu0 %vm437_vm3, %v742_v37 }
 0x1fa   :  { %3087 = vmatpush3.msra.mxu1 %v745_v18  ;;  %3088 = vmatprep.mubr.msk.f32.mxu1 %vm3385_vm2, %v3384_v1  ;;  %v3212_v18 = vpack.c.bf16 %v1138_v16, %v1137_v15 }
 0x1fb   :  { %3093 = vmatprep.mubr.msk.f32.mxu0 %vm3385_vm2, %v3384_v1  ;;  %3092 = vmatpush3.msk.msra.mxu0 %vm138_vm0, %v1052_v39 }
 0x1fc   :  { %3211 = vmatprep.subr.bf16.mxu1 %v3386_v20  ;;  %3217 = vmatprep.subr.bf16.mxu0 %v3386_v20 }
 0x1fd   :  { %3089 = vmatmul.mubr.msk.f32.vlgmr.msra.gmra.mrb[10].mxu1 %vm437_vm3, %v743_v38 }
 0x1fe   :  { %3104 = vmatprep.mubr.msk.f32.mxu1 %vm3385_vm2, %v3384_v1  ;;  %3213 = vmatpush3.bf16.msra.mxu1 %v3212_v18 }
 0x1ff   :  { %3214 = vmatprep.subr.bf16.mxu1 %v3386_v20 }
 0x202   :  { %3216 = vmatpush3.bf16.msra.mxu1 %v3215_v25 }
 0x203   :  { %3223 = vmatprep.subr.bf16.mxu1 %v3386_v20 }
 0x2b2   :  { %v815_v40 = vpop.f32.mrb[8].mxu0 }
 0x2b3   :  { %v2919_v41 = vmul.f32 -1.442695, %v815_v40  ;;  %v1044_v42 = vmax.f32 %v815_v40, 0.0  ;;  %v3075_v43 = vpop.f32.mrb[9].mxu0 }
 0x2b5   :  { %3275 = vpow2.f32 %v2919_v41  ;;  %v1048_v44 = vadd.f32 %v1044_v42, %v740_v24  ;;  %v1224_v24 = vld [vmem:[%s3465_s6 + $0x10] sm:$0xff]  ;;  %s3899_s6 = sld [smem:[#allocation20_spill]] }
 0x2b6   :  { %v3221_v27 = vpack.c.bf16 %v1225_v26, %v1224_v24 }
 0x2b7   :  { %3094 = vmatmul.mubr.msk.f32.vlgmr.msra.gmra.mrb[12].mxu0 %vm134_vm1, %v1048_v44 }
 0x2b8   :  { %3115 = vmatprep.mubr.msk.f32.mxu0 %vm3385_vm2, %v3384_v1  ;;  %3219 = vmatpush3.bf16.msra.mxu0 %v3218_v21  ;;  %v2920_v21 = vld [vmem:[%s3450_s19] ss:$0 sm:$0xff]  ;;  %s3897_s19 = sld [smem:[#allocation18_spill]] }
 0x2b9   :  { %3220 = vmatprep.subr.bf16.mxu0 %v3386_v20 }
 0x2bc   :  { %3222 = vmatpush3.bf16.msra.mxu0 %v3221_v27 }
 0x2bd   :  { %3226 = vmatprep.subr.bf16.mxu0 %v3386_v20 }
 0x2bf   :  { %v3276_v45 = vpop.eup %3275 }
 0x2c0   :  { %v1041_v46 = vadd.f32 1.0, %v3276_v45 }
 0x2c2   :  { %3277 = vrcp.f32 %v1041_v46 }
 0x2cc   :  { %v3278_v47 = vpop.eup %3277  ;;  %v888_v48 = vpop.f32.mrb[8].mxu1 }
 0x2cd   :  { %v961_v49 = vpop.f32.mrb[10].mxu0  ;;  %v1045_v50 = vmul.f32 %v3278_v47, %v888_v48  ;;  %v3080_v52 = vpop.f32.mrb[9].mxu1 }
 0x2ce   :  { %v1046_v51 = vmul.f32 %v3278_v47, %v961_v49  ;;  %v3085_v53 = vpop.f32.mrb[11].mxu0 }
 0x2cf   :  { %v1049_v55 = vadd.f32 %v1045_v50, %v741_v36 }
 0x2d0   :  { %v1050_v56 = vadd.f32 %v1046_v51, %v742_v37  ;;  %v1034_v57 = vpop.f32.mrb[10].mxu1 }
 0x2d1   :  { %v1047_v58 = vmul.f32 %v3278_v47, %v1034_v57  ;;  %v3090_v59 = vpop.f32.mrb[11].mxu1  ;;  %v1319_v60 = vmul.f32 %v2927_v54, %v1049_v55  ;;  %v1338_v9 = vmul.f32 %v2928_v0, %v1049_v55 }
 0x2d2   :  { %v1324_v63 = vmul.f32 %v2927_v54, %v1050_v56  ;;  %v1342_v10 = vmul.f32 %v2928_v0, %v1050_v56 }
 0x2d3   :  { %v1051_v61 = vadd.f32 %v1047_v58, %v743_v38  ;;  %v1321_v62 = vsel %vm1320_vm4, %v1319_v60, 0.0  ;;  %v1339_v11 = vsel %vm1320_vm4, %v1338_v9, 0.0 }
 0x2d4   :  { %1322 = vadd.xlane.f32.xlu0 %v1321_v62  ;;  %v1325_v8 = vsel %vm1320_vm4, %v1324_v63, 0.0  ;;  %v1343_v12 = vsel %vm1320_vm4, %v1342_v10, 0.0 }
 0x2d5   :  { %v1328_v3 = vmul.f32 %v2927_v54, %v1051_v61  ;;  %v1346_v13 = vmul.f32 %v2928_v0, %v1051_v61 }
 0x2d7   :  { %v1329_v7 = vsel %vm1320_vm4, %v1328_v3, 0.0  ;;  %v1347_v14 = vsel %vm1320_vm4, %v1346_v13, 0.0 }
 0x2d8   :  { %1330 = vadd.xlane.f32.xlu1 %v1329_v7  ;;  %1326 = vadd.xlane.f32.xlu0 %v1325_v8 }
 0x2dc   :  { %1340 = vadd.xlane.f32.xlu1 %v1339_v11  ;;  %1344 = vadd.xlane.f32.xlu0 %v1343_v12 }
 0x2e0   :  { %1348 = vadd.xlane.f32.xlu1 %v1347_v14 }
 0x361   :  { %v3663_v28 = vpop.xlane.xlu0 %1322 }
 0x362   :  { %v1355_v31 = vmul.f32 %v3663_v28, %v3663_v28 }
 0x365   :  { %v1331_v29 = vpop.xlane.xlu1 %1330  ;;  %v3665_v30 = vpop.xlane.xlu0 %1326 }
 0x366   :  { %v1356_v32 = vmul.f32 %v3665_v30, %v3665_v30  ;;  %v1358_v33 = vmul.f32 %v1331_v29, %v1331_v29 }
 0x368   :  { %v1357_v34 = vadd.f32 %v1356_v32, %v1355_v31 }
 0x369   :  { %v1341_v36 = vpop.xlane.xlu1 %1340  ;;  %v1345_v38 = vpop.xlane.xlu0 %1344 }
 0x36a   :  { %v1359_v35 = vadd.f32 %v1358_v33, %v1357_v34  ;;  %v1350_v40 = vmul.f32 %v1341_v36, %v3663_v28  ;;  %v1351_v41 = vmul.f32 %v1345_v38, %v3665_v30 }
 0x36c   :  { %3279 = vrsqrt.f32 %v1359_v35  ;;  %v1360_v37 = vadd.f32 1e-08, %v1359_v35  ;;  %v1352_v44 = vadd.f32 %v1351_v41, %v1350_v40  ;;  %vm1380_vm5 = vcmp.eq.f32.partialorder %v1359_v35, inf }
 0x36d   :  { %v1349_v39 = vpop.xlane.xlu1 %1348  ;;  %v1383_v46 = vand.u32 2147483648, %v1359_v35  ;;  %vm1382_vm6 = vcmp.eq.f32.partialorder %v1359_v35, 0.0 }
 0x36e   :  { %3281 = vrcp.f32 %v1360_v37  ;;  %v1353_v42 = vmul.f32 %v1349_v39, %v1331_v29 }
 0x370   :  { %v1354_v47 = vadd.f32 %v1353_v42, %v1352_v44 }
 0x376   :  { %v3280_v43 = vpop.eup %3279 }
 0x377   :  { %v1379_v45 = vmul.f32 %v3280_v43, %v1359_v35 }
 0x378   :  { %v3282_v48 = vpop.eup %3281 }
 0x379   :  { %v1381_v49 = vsel %vm1380_vm5, %v1359_v35, %v1379_v45  ;;  %v1362_v51 = vmul.f32 %v3282_v48, %v1354_v47  ;;  %v1438_v47 = vld [vmem:[%s3887_s0] sm:$0xff]  ;;  %v1439_v48 = vld [vmem:[%s3887_s0 + $0x8] sm:$0xff]  ;;  %vm1606_vm5 = vcmask 23552  }
 0x37a   :  { %v1384_v50 = vsel %vm1382_vm6, %v1383_v46, %v1381_v49  ;;  %v3224_v49 = vpack.c.bf16 %v1439_v48, %v1438_v47 }
 0x37b   :  { %v1385_v52 = vadd.f32 1e-08, %v1384_v50  ;;  %v1363_v53 = vmul.f32 %v1362_v51, %v3663_v28  ;;  %v1365_v54 = vmul.f32 %v1362_v51, %v3665_v30  ;;  %v1367_v55 = vmul.f32 %v1362_v51, %v1331_v29  ;;  %v1520_v50 = vld [vmem:[%s3888_s5] sm:$0xff]  ;;  %v1521_v51 = vld [vmem:[%s3888_s5 + $0x8] sm:$0xff] }
 0x37d   :  { %3283 = vrcp.f32 %v1385_v52  ;;  %v3675_v56 = vsub.f32 %v1341_v36, %v1363_v53  ;;  %v3677_v57 = vsub.f32 %v1345_v38, %v1365_v54  ;;  %v1368_v58 = vsub.f32 %v1349_v39, %v1367_v55  ;;  %v2925_v53 = vld [vmem:[%s3889_s9] ss:$0 sm:$0xff] }
 0x37e   :  { %v3227_v52 = vpack.c.bf16 %v1521_v51, %v1520_v50 }
 0x37f   :  { %v1369_v59 = vmul.f32 %v1368_v58, %v3665_v30  ;;  %v1370_v60 = vmul.f32 %v3677_v57, %v1331_v29  ;;  %v1372_v61 = vmul.f32 %v3675_v56, %v1331_v29  ;;  %v1373_v62 = vmul.f32 %v1368_v58, %v3663_v28 }
 0x380   :  { %v1375_v63 = vmul.f32 %v3677_v57, %v3663_v28  ;;  %v1376_v0 = vmul.f32 %v3675_v56, %v3665_v30  ;;  %v1390_v3 = vmul.f32 %v3675_v56, %v3675_v56  ;;  %v1391_v7 = vmul.f32 %v3677_v57, %v3677_v57 }
 0x381   :  { %v3691_v8 = vsub.f32 %v1369_v59, %v1370_v60  ;;  %v3693_v9 = vsub.f32 %v1372_v61, %v1373_v62  ;;  %v1393_v12 = vmul.f32 %v1368_v58, %v1368_v58 }
 0x382   :  { %v1377_v10 = vsub.f32 %v1375_v63, %v1376_v0  ;;  %v1392_v11 = vadd.f32 %v1391_v7, %v1390_v3  ;;  %v2923_v63 = vld [vmem:[%s3890_s17] ss:$0 sm:$0xff] }
 0x383   :  { %v1407_v13 = vmul.f32 %v3691_v8, %v3691_v8  ;;  %v1408_v14 = vmul.f32 %v3693_v9, %v3693_v9  ;;  %v1435_v0 = vld [vmem:[%s3891_s21] sm:$0x3] }
 0x384   :  { %v1394_v15 = vadd.f32 %v1393_v12, %v1392_v11  ;;  %v1410_v17 = vmul.f32 %v1377_v10, %v1377_v10  ;;  %v1605_v11 = vld [vmem:[%s3892_s25] sm:$0x7] }
 0x385   :  { %v1409_v16 = vadd.f32 %v1408_v14, %v1407_v13 }
 0x386   :  { %3285 = vrsqrt.f32 %v1394_v15  ;;  %vm1397_vm8 = vcmp.eq.f32.partialorder %v1394_v15, inf  ;;  %vm1399_vm9 = vcmp.eq.f32.partialorder %v1394_v15, 0.0 }
 0x387   :  { %v3699_v18 = vpop.eup %3283  ;;  %v1411_v19 = vadd.f32 %v1410_v17, %v1409_v16 }
 0x388   :  { %v1389_v22 = vmul.f32 %v3699_v18, %v1331_v29  ;;  %v1400_v29 = vand.u32 2147483648, %v1394_v15  ;;  %v1387_v14 = vmul.f32 %v3699_v18, %v3663_v28  ;;  %v1388_v28 = vmul.f32 %v3699_v18, %v3665_v30  ;;  %v1522_v30 = vld [vmem:[%s3888_s5 + $0x10] sm:$0xff] }
 0x389   :  { %3287 = vrsqrt.f32 %v1411_v19  ;;  %vm1414_vm10 = vcmp.eq.f32.partialorder %v1411_v19, inf  ;;  %v1417_v37 = vand.u32 2147483648, %v1411_v19  ;;  %vm1416_vm11 = vcmp.eq.f32.partialorder %v1411_v19, 0.0 }
 0x38a   :  { %v1132_v23 = vpop.f32.mrb[12].mxu0 }
 0x38b   :  { %v1133_v24 = vadd.f32 %v2920_v21, %v1132_v23  ;;  %v3095_v25 = vpop.f32.mrb[13].mxu0 }
 0x38d   :  { %v1136_v26 = vmax.f32 %v1133_v24, 0.0 }
 0x38f   :  { %3105 = vmatmul.mubr.msk.f32.vlgmr.msra.gmra.mrb[12].mxu1 %vm1148_vm7, %v1136_v26  ;;  %3116 = vmatmul.mubr.msk.f32.vlgmr.msra.gmra.mrb[14].mxu0 %vm1148_vm7, %v1136_v26  ;;  %v1831_v26 = vld [vmem:[%s3894_s3] sm:$0xf] }
 0x390   :  { %3122 = vmatprep.mubr.msk.f32.mxu1 %vm3385_vm2, %v3384_v1  ;;  %3133 = vmatprep.mubr.msk.f32.mxu0 %vm3385_vm2, %v3384_v1  ;;  %v3286_v27 = vpop.eup %3285 }
 0x391   :  { %v1396_v31 = vmul.f32 %v3286_v27, %v1394_v15  ;;  %3225 = vmatpush3.bf16.msra.mxu1 %v3224_v49  ;;  %3228 = vmatpush3.bf16.msra.mxu0 %v3227_v52 }
 0x392   :  { %3136 = vmatprep.subr.mxu1 %v3384_v1  ;;  %3229 = vmatprep.subr.bf16.mxu0 %v3386_v20 }
 0x393   :  { %v3288_v32 = vpop.eup %3287  ;;  %v1398_v33 = vsel %vm1397_vm8, %v1394_v15, %v1396_v31 }
 0x394   :  { %v1401_v34 = vsel %vm1399_vm9, %v1400_v29, %v1398_v33  ;;  %v1413_v35 = vmul.f32 %v3288_v32, %v1411_v19  ;;  %v1830_v29 = vld [vmem:[%s3895_s8] sm:$0xf] }
 0x395   :  { %v1402_v36 = vadd.f32 1e-08, %v1401_v34  ;;  %v2931_v32 = vld [vmem:[%s3896_s14] ss:$0 sm:$0xff] }
 0x396   :  { %v1415_v38 = vsel %vm1414_vm10, %v1411_v19, %v1413_v35  ;;  %v2929_v19 = vld [vmem:[%s3893_s29] ss:$0 sm:$0xff] }
 0x397   :  { %3289 = vrcp.f32 %v1402_v36  ;;  %v1418_v39 = vsel %vm1416_vm11, %v1417_v37, %v1415_v38 }
 0x398   :  { %v1419_v40 = vadd.f32 1e-08, %v1418_v39 }
 0x39a   :  { %3291 = vrcp.f32 %v1419_v40 }
 0x3a1   :  { %v3290_v41 = vpop.eup %3289 }
 0x3a2   :  { %v1406_v42 = vmul.f32 %v3290_v41, %v1368_v58  ;;  %v1404_v12 = vmul.f32 %v3290_v41, %v3675_v56  ;;  %v1405_v56 = vmul.f32 %v3290_v41, %v3677_v57  ;;  %v2148_v41 = vld [vmem:[%s3897_s19] sm:$0xff] }
 0x3a4   :  { %v3292_v43 = vpop.eup %3291  ;;  %v1430_v44 = vsel %vm1424_vm12, %v1389_v22, %v1406_v42  ;;  %v1425_v15 = vsel %vm1424_vm12, %v1387_v14, %v1404_v12  ;;  %v1428_v17 = vsel %vm1424_vm12, %v1388_v28, %v1405_v56  ;;  %v2149_v42 = vld [vmem:[%s3898_s24] sm:$0xff] }
 0x3a5   :  { %v1423_v45 = vmul.f32 %v3292_v43, %v1377_v10  ;;  %v1421_v13 = vmul.f32 %v3292_v43, %v3691_v8  ;;  %v1422_v16 = vmul.f32 %v3292_v43, %v3693_v9  ;;  %v1523_v9 = vld [vmem:[%s3888_s5 + $0x18] sm:$0xff]  ;;  %v2530_v12 = vld [vmem:[%s3900_s20] sm:$0xff] }
 0x3a6   :  { %v3230_v18 = vpack.c.bf16 %v1523_v9, %v1522_v30 }
 0x3a7   :  { %v3711_v46 = vsel %vm1426_vm13, %v1430_v44, %v1423_v45  ;;  %v1427_v8 = vsel %vm1426_vm13, %v1425_v15, %v1421_v13  ;;  %v1429_v57 = vsel %vm1426_vm13, %v1428_v17, %v1422_v16 }
 0x3a8   :  { %3231 = vmatpush3.bf16.msra.mxu0 %v3230_v18 }
 0x3a9   :  { %3146 = vmatprep.subr.mxu0 %v3384_v1 }
 0x462   :  { %v1218_v54 = vpop.f32.mrb[12].mxu1  ;;  %v1299_v55 = vpop.f32.mrb[14].mxu0 }
 0x463   :  { %v3720_v58 = vadd.f32 %v2925_v53, %v1299_v55  ;;  %v3106_v59 = vpop.f32.mrb[13].mxu1  ;;  %v3117_v60 = vpop.f32.mrb[15].mxu0  ;;  %v3725_v7 = vadd.f32 %v2923_v63, %v1218_v54 }
 0x465   :  { %v1432_v61 = vmul.f32 0.5, %v3720_v58 }
 0x467   :  { %v1433_v62 = vmul.f32 1.442695, %v1432_v61 }
 0x469   :  { %3293 = vpow2.f32 %v1433_v62 }
 0x473   :  { %v3294_v3 = vpop.eup %3293 }
 0x474   :  { %v1436_v10 = vmul.f32 %v3294_v3, %v1435_v0 }
 0x476   :  { %v1437_v20 = vadd.f32 %v1436_v10, %v3725_v7 }
 0x478   :  { %3123 = vmatmul.mubr.msk.f32.vlgmr.msra.gmra.mrb[14].mxu1 %vm1307_vm14, %v1437_v20 }
 0x479   :  { %3137 = vmatpush3.msk.msra.mxu1 %vm1610_vm15, %v1605_v11  ;;  %3138 = vmatprep.mubr.msk.f32.mxu1 %vm3385_vm2, %v3384_v1 }
 0x47a   :  { %3141 = vmatprep.subr.mxu1 %v3384_v1 }
 0x47c   :  { %3139 = vmatmul.mubr.msk.f32.vlgmr.msra.gmra.mrb[16].mxu1 %vm1606_vm5, %v1427_v8 }
 0x47d   :  { %3142 = vmatpush3.msk.msra.mxu1 %vm1610_vm15, %v1605_v11  ;;  %3143 = vmatprep.mubr.msk.f32.mxu1 %vm3385_vm2, %v3384_v1 }
 0x47e   :  { %3151 = vmatprep.subr.mxu1 %v3384_v1 }
 0x480   :  { %3144 = vmatmul.mubr.msk.f32.vlgmr.msra.gmra.mrb[18].mxu1 %vm1606_vm5, %v1429_v57 }
 0x481   :  { %3153 = vmatprep.mubr.msk.f32.mxu1 %vm3385_vm2, %v3384_v1  ;;  %3152 = vmatpush3.msk.msra.mxu1 %vm138_vm0, %v1830_v29 }
 0x482   :  { %3161 = vmatprep.subr.mxu1 %v3384_v1 }
 0x54b   :  { %v1516_v21 = vpop.f32.mrb[14].mxu1 }
 0x54c   :  { %v1517_v22 = vadd.f32 %v2929_v19, %v1516_v21  ;;  %v3124_v23 = vpop.f32.mrb[15].mxu1 }
 0x54e   :  { %3134 = vmatmul.mubr.msk.f32.vlgmr.msra.gmra.mrb[16].mxu0 %vm1148_vm7, %v1517_v22 }
 0x54f   :  { %v3759_v24 = vpop.f32.mrb[16].mxu1  ;;  %3147 = vmatpush3.msk.msra.mxu0 %vm1610_vm15, %v1605_v11  ;;  %3148 = vmatprep.mubr.msk.f32.mxu0 %vm3385_vm2, %v3384_v1  ;;  %v2456_v11 = vld [vmem:[%s3899_s6] sm:$0xff] }
 0x550   :  { %v3140_v25 = vpop.f32.mrb[17].mxu1  ;;  %3156 = vmatprep.subr.mxu0 %v3384_v1  ;;  %v2141_v62 = vsel %vm134_vm1, %v3759_v24, 0.0 }
 0x552   :  { %3149 = vmatmul.mubr.msk.f32.vlgmr.msra.gmra.mrb[18].mxu0 %vm1606_vm5, %v3711_v46 }
 0x553   :  { %v1753_v27 = vpop.f32.mrb[18].mxu1  ;;  %3157 = vmatpush3.msk.msra.mxu0 %vm138_vm0, %v1831_v26  ;;  %3158 = vmatprep.mubr.msk.f32.mxu0 %vm3385_vm2, %v3384_v1 }
 0x554   :  { %v3145_v31 = vpop.f32.mrb[19].mxu1  ;;  %3166 = vmatprep.subr.mxu0 %v3384_v1  ;;  %v2142_v63 = vsel %vm134_vm1, %v1753_v27, 0.0 }
 0x556   :  { %3159 = vmatmul.mubr.msk.f32.vlgmr.msra.gmra.mrb[20].mxu0 %vm134_vm1, %v3759_v24 }
 0x557   :  { %3167 = vmatpush3.msk.msra.mxu0 %vm138_vm0, %v1831_v26  ;;  %3168 = vmatprep.mubr.msk.f32.mxu0 %vm3385_vm2, %v3384_v1 }
 0x558   :  { %3176 = vmatprep.subr.mxu0 %v3384_v1 }
 0x621   :  { %v1600_v33 = vpop.f32.mrb[16].mxu0 }
 0x622   :  { %v1601_v34 = vadd.f32 %v2931_v32, %v1600_v33  ;;  %v3135_v35 = vpop.f32.mrb[17].mxu0 }
 0x623   :  { %v2812_v35 = vmul.f32 1.442695, %v3720_v58 }
 0x624   :  { %v1604_v36 = vmax.f32 %v1601_v34, 0.0 }
 0x625   :  { %v1826_v37 = vpop.f32.mrb[18].mxu0 }
 0x626   :  { %v3150_v38 = vpop.f32.mrb[19].mxu0  ;;  %3154 = vmatmul.mubr.msk.f32.vlgmr.msra.gmra.mrb[20].mxu1 %vm134_vm1, %v1604_v36  ;;  %3169 = vmatmul.mubr.msk.f32.vlgmr.msra.gmra.mrb[22].mxu0 %vm134_vm1, %v1826_v37  ;;  %v2140_v49 = vsel %vm134_vm1, %v1604_v36, 0.0  ;;  %v2143_v0 = vsel %vm134_vm1, %v1826_v37, 0.0  ;;  %v2810_v36 = vmul.f32 %v3725_v7, %v3725_v7 }
 0x627   :  { %3162 = vmatpush3.msk.msra.mxu1 %vm138_vm0, %v1831_v26  ;;  %3163 = vmatprep.mubr.msk.f32.mxu1 %vm3385_vm2, %v3384_v1  ;;  %vm2815_vm0 = vcmask 123904  }
 0x628   :  { %3171 = vmatprep.subr.mxu1 %v3384_v1  ;;  %3178 = vmatprep.mubr.msk.f32.mxu0 %vm3385_vm2, %v3384_v1 }
 0x629   :  { %v1980_v39 = vpop.f32.mrb[20].mxu0  ;;  %3177 = vmatpush3.msra.mxu0 %v2149_v42 }
 0x62a   :  { %v3160_v40 = vpop.f32.mrb[21].mxu0  ;;  %3164 = vmatmul.mubr.msk.f32.vlgmr.msra.gmra.mrb[22].mxu1 %vm134_vm1, %v1753_v27  ;;  %3186 = vmatprep.subr.mxu0 %v3384_v1 }
 0x62b   :  { %3173 = vmatprep.mubr.msk.f32.mxu1 %vm3385_vm2, %v3384_v1  ;;  %3172 = vmatpush3.msra.mxu1 %v2148_v41 }
 0x62c   :  { %3181 = vmatprep.subr.mxu1 %v3384_v1 }
 0x6f9   :  { %v1904_v43 = vpop.f32.mrb[20].mxu1  ;;  %v2126_v44 = vpop.f32.mrb[22].mxu0 }
 0x6fa   :  { %v2947_v45 = vmul.f32 -1.442695, %v1904_v43  ;;  %v2136_v46 = vmax.f32 %v1904_v43, 0.0  ;;  %v3155_v47 = vpop.f32.mrb[21].mxu1  ;;  %v3170_v48 = vpop.f32.mrb[23].mxu0 }
 0x6fc   :  { %3295 = vpow2.f32 %v2947_v45  ;;  %v2144_v50 = vadd.f32 %v2140_v49, %v2136_v46 }
 0x6fd   :  { %v2053_v51 = vpop.f32.mrb[22].mxu1 }
 0x6fe   :  { %v3165_v52 = vpop.f32.mrb[23].mxu1  ;;  %3174 = vmatmul.mubr.msk.f32.vlgmr.msra.gmra.mrb[24].mxu1 %vm437_vm3, %v2144_v50 }
 0x6ff   :  { %3182 = vmatpush3.msra.mxu1 %v2149_v42  ;;  %3183 = vmatprep.mubr.msk.f32.mxu1 %vm3385_vm2, %v3384_v1 }
 0x700   :  { %3191 = vmatprep.subr.mxu1 %v3384_v1 }
 0x706   :  { %v3296_v53 = vpop.eup %3295 }
 0x707   :  { %v2133_v54 = vadd.f32 1.0, %v3296_v53 }
 0x709   :  { %3297 = vrcp.f32 %v2133_v54 }
 0x713   :  { %v3298_v55 = vpop.eup %3297 }
 0x714   :  { %v2139_v59 = vmul.f32 %v3298_v55, %v2126_v44  ;;  %v2138_v60 = vmul.f32 %v3298_v55, %v2053_v51  ;;  %v2137_v61 = vmul.f32 %v3298_v55, %v1980_v39 }
 0x716   :  { %v2147_v3 = vadd.f32 %v2143_v0, %v2139_v59  ;;  %v2146_v10 = vadd.f32 %v2142_v63, %v2138_v60  ;;  %v2145_v20 = vadd.f32 %v2141_v62, %v2137_v61 }
 0x718   :  { %3179 = vmatmul.mubr.msk.f32.vlgmr.msra.gmra.mrb[24].mxu0 %vm437_vm3, %v2145_v20  ;;  %3184 = vmatmul.mubr.msk.f32.vlgmr.msra.gmra.mrb[26].mxu1 %vm437_vm3, %v2146_v10 }
 0x719   :  { %3187 = vmatpush3.msra.mxu0 %v2149_v42  ;;  %3188 = vmatprep.mubr.msk.f32.mxu0 %vm3385_vm2, %v3384_v1 }
 0x71a   :  { %3193 = vmatprep.mubr.msk.f32.mxu1 %vm3385_vm2, %v3384_v1  ;;  %3196 = vmatprep.subr.mxu0 %v3384_v1 }
 0x71b   :  { %3192 = vmatpush3.msra.mxu1 %v2456_v11 }
 0x71c   :  { %3189 = vmatmul.mubr.msk.f32.vlgmr.msra.gmra.mrb[26].mxu0 %vm437_vm3, %v2147_v3  ;;  %3201 = vmatprep.subr.mxu1 %v3384_v1 }
 0x71d   :  { %3198 = vmatprep.mubr.msk.f32.mxu0 %vm3385_vm2, %v3384_v1  ;;  %3197 = vmatpush3.msra.mxu0 %v2530_v12 }
 0x71e   :  { %3206 = vmatprep.subr.mxu0 %v3384_v1 }
 0x7d1   :  { %v2219_v13 = vpop.f32.mrb[24].mxu1 }
 0x7d2   :  { %v2952_v14 = vmul.f32 -1.442695, %v2219_v13  ;;  %v2448_v15 = vmax.f32 %v2219_v13, 0.0  ;;  %v3175_v56 = vpop.f32.mrb[25].mxu1 }
 0x7d4   :  { %3299 = vpow2.f32 %v2952_v14  ;;  %v2452_v8 = vadd.f32 %v2448_v15, %v2144_v50 }
 0x7d6   :  { %3194 = vmatmul.mubr.msk.f32.vlgmr.msra.gmra.mrb[28].mxu1 %vm437_vm3, %v2452_v8 }
 0x7d7   :  { %3202 = vmatpush3.msra.mxu1 %v2530_v12  ;;  %3203 = vmatprep.mubr.msk.f32.mxu1 %vm3385_vm2, %v3384_v1 }
 0x7de   :  { %v3300_v16 = vpop.eup %3299 }
 0x7df   :  { %v2445_v28 = vadd.f32 1.0, %v3300_v16 }
 0x7e1   :  { %3301 = vrcp.f32 %v2445_v28 }
 0x7e2   :  { %3303 = vpow2.f32 %v2812_v35 }
 0x7eb   :  { %v3302_v17 = vpop.eup %3301  ;;  %v2292_v57 = vpop.f32.mrb[24].mxu0 }
 0x7ec   :  { %v2365_v30 = vpop.f32.mrb[26].mxu1  ;;  %v2449_v9 = vmul.f32 %v3302_v17, %v2292_v57  ;;  %v3180_v19 = vpop.f32.mrb[25].mxu0 }
 0x7ed   :  { %v2450_v18 = vmul.f32 %v3302_v17, %v2365_v30  ;;  %v3185_v21 = vpop.f32.mrb[27].mxu1  ;;  %v3304_v42 = vpop.eup %3303 }
 0x7ee   :  { %v2453_v22 = vadd.f32 %v2449_v9, %v2145_v20 }
 0x7ef   :  { %v2454_v23 = vadd.f32 %v2450_v18, %v2146_v10  ;;  %v2438_v24 = vpop.f32.mrb[26].mxu0 }
 0x7f0   :  { %v2451_v25 = vmul.f32 %v3302_v17, %v2438_v24  ;;  %v3190_v26 = vpop.f32.mrb[27].mxu0  ;;  %3199 = vmatmul.mubr.msk.f32.vlgmr.msra.gmra.mrb[28].mxu0 %vm437_vm3, %v2453_v22 }
 0x7f1   :  { %3204 = vmatmul.mubr.msk.f32.vlgmr.msra.gmra.mrb[30].mxu1 %vm437_vm3, %v2454_v23  ;;  %3207 = vmatpush3.msra.mxu0 %v2530_v12 }
 0x7f2   :  { %3208 = vmatprep.mubr.msk.f32.mxu0 %vm3385_vm2, %v3384_v1  ;;  %v2455_v27 = vadd.f32 %v2451_v25, %v2147_v3  ;;  %v2809_v1 = vadd.f32 1.0, %v3720_v58 }
 0x7f4   :  { %3209 = vmatmul.mubr.msk.f32.vlgmr.msra.gmra.mrb[30].mxu0 %vm437_vm3, %v2455_v27  ;;  %v2811_v45 = vsub.f32 %v2809_v1, %v2810_v36 }
 0x7f6   :  { %v2814_v50 = vsub.f32 %v2811_v45, %v3304_v42 }
 0x7f8   :  { %v2816_v51 = vsel %vm2815_vm0, %v2814_v50, 0.0 }
 0x8a9   :  { %v2526_v31 = vpop.f32.mrb[28].mxu1 }
 0x8aa   :  { %v2756_v29 = vsub.f32 %v2526_v31, %v3562_v2  ;;  %2750 = vst.msk [vmem:[#allocation2] sm:$0x3] %vm1320_vm4, %v2526_v31  ;;  %v3195_v32 = vpop.f32.mrb[29].mxu1 }
 0x8ac   :  { %v2757_v33 = vmul.f32 %v2756_v29, %v2756_v29 }
 0x8ae   :  { %v2758_v34 = vsel %vm1320_vm4, %v2757_v33, 0.0 }
 0x8af   :  { %2759 = vadd.xlane.f32.xlu0 %v2758_v34 }
 0x8c3   :  { %v2600_v37 = vpop.f32.mrb[28].mxu0 }
 0x8c4   :  { %v2673_v38 = vpop.f32.mrb[30].mxu1  ;;  %2751 = vst.msk [vmem:[#allocation4] sm:$0x3] %vm1320_vm4, %v2600_v37  ;;  %v2769_v2 = vsub.f32 %v2600_v37, %v3568_v4  ;;  %v3200_v40 = vpop.f32.mrb[29].mxu0 }
 0x8c5   :  { %2753 = vst.msk [vmem:[#allocation4 + $0x2] sm:$0x3] %vm1320_vm4, %v2673_v38  ;;  %v2782_v39 = vsub.f32 %v2673_v38, %v3580_v5  ;;  %v3205_v41 = vpop.f32.mrb[31].mxu1 }
 0x8c6   :  { %v2770_v43 = vmul.f32 %v2769_v2, %v2769_v2 }
 0x8c7   :  { %v2783_v44 = vmul.f32 %v2782_v39, %v2782_v39  ;;  %v2746_v46 = vpop.f32.mrb[30].mxu0 }
 0x8c8   :  { %2755 = vst.msk [vmem:[#allocation4 + $0x4] sm:$0x3] %vm1320_vm4, %v2746_v46  ;;  %v2795_v47 = vsub.f32 %v2746_v46, %v3586_v6  ;;  %v3210_v48 = vpop.f32.mrb[31].mxu0  ;;  %v2771_v4 = vsel %vm1320_vm4, %v2770_v43, 0.0 }
 0x8c9   :  { %v2784_v49 = vsel %vm1320_vm4, %v2783_v44, 0.0  ;;  %2772 = vadd.xlane.f32.xlu1 %v2771_v4 }
 0x8ca   :  { %2785 = vadd.xlane.f32.xlu0 %v2784_v49  ;;  %v2796_v5 = vmul.f32 %v2795_v47, %v2795_v47 }
 0x8cc   :  { %v2797_v52 = vsel %vm1320_vm4, %v2796_v5, 0.0 }
 0x8cd   :  { %2798 = vadd.xlane.f32.xlu1 %v2797_v52 }
 0x8ce   :  { %2817 = vadd.xlane.f32.xlu0 %v2816_v51 }
 0x8de   :  { %1304 = vrot.lane.b32.xlu1 %v3720_v58, %s3387_s27 }
 0x8df   :  { %3316 = shalt.err (!%p3313_p4)
}
 0x8e0   :  { %s3317_s2 = scalar_lea.hbm %s3545_s4, 32 }
 0x8e1   :  { %p3318_p5 = scmp.ne.s32.totalorder %s3545_s4, %s3317_s2  ;;  %p3321_p6 = scmp.lt.u32.totalorder %s3317_s2, %s3545_s4 }
 0x8e3   :  { %p3323_p7 = pnand %p3321_p6, %p3318_p5 }
 0x8e5   :  { %3326 = shalt.err (!%p3323_p7)
}
 0x8e6   :  { %2842 = dma.vmem_to_hbm [thread:$0]  %s2840_s23, 32, %s3545_s4, [#allocation3]  }
 0x8e7   :  { %s3327_s7 = scalar_lea.vmem %s3845_s28, 96  ;;  %p3332_p9 = scmp.lt.s32.totalorder %s3845_s28, %s3845_s28 }
 0x8e8   :  { %p3328_p8 = scmp.ne.s32.totalorder %s3845_s28, %s3327_s7  ;;  %p3333_p10 = scmp.lt.s32.totalorder %s3327_s7, %s3327_s7 }
 0x8ea   :  { %p3334_p11 = por %p3333_p10, %p3332_p9 }
 0x8ec   :  { %p3335_p12 = pnand %p3334_p11, %p3328_p8 }
 0x8ee   :  { %3338 = shalt.err (!%p3335_p12)
}
 0x8ef   :  { %s3339_s10 = scalar_lea.hbm %s3550_s13, 96 }
 0x8f0   :  { %p3340_p13 = scmp.ne.s32.totalorder %s3550_s13, %s3339_s10  ;;  %p3343_p0 = scmp.lt.u32.totalorder %s3339_s10, %s3550_s13 }
 0x8f2   :  { %p3345_p1 = pnand %p3343_p0, %p3340_p13 }
 0x8f4   :  { %3348 = shalt.err (!%p3345_p1)
}
 0x8f5   :  { %s3390_s11 = smov 32   ;;  %s3391_s4 = smov 2   ;;  %vm2761_vm1 = vcmask 1041408   ;;  %vm1309_vm2 = vcmask 254976   ;;  %vm2829_vm3 = vcmask 8192  }
 0x8f6   :  { %2854 = dma.vmem_to_hbm [thread:$0]  %s3845_s28, 96, %s3550_s13, [#allocation5], %s3390_s11, %s3390_s11, %s3391_s4  }
 0x93c   :  { %v2760_v6 = vpop.xlane.xlu0 %2759 }
 0x93d   :  { %v2762_v58 = vsel %vm2761_vm1, %v2760_v6, 0.0 }
 0x93e   :  { %v2763_v53 = vrot.slane %v2762_v58, 4 }
 0x940   :  { %v2764_v54 = vadd.f32 %v2763_v53, %v2762_v58 }
 0x942   :  { %v2765_v55 = vrot.slane %v2764_v54, 2 }
 0x944   :  { %v2766_v3 = vadd.f32 %v2765_v55, %v2764_v54 }
 0x946   :  { %v2767_v16 = vrot.slane %v2766_v3, 1 }
 0x948   :  { %v2768_v25 = vadd.f32 %v2767_v16, %v2766_v3 }
 0x956   :  { %v2773_v60 = vpop.xlane.xlu1 %2772 }
 0x957   :  { %v2786_v59 = vpop.xlane.xlu0 %2785  ;;  %v2774_v62 = vsel %vm2761_vm1, %v2773_v60, 0.0 }
 0x958   :  { %v2787_v61 = vsel %vm2761_vm1, %v2786_v59, 0.0  ;;  %v2775_v0 = vrot.slane %v2774_v62, 4 }
 0x959   :  { %v2788_v63 = vrot.slane %v2787_v61, 4 }
 0x95a   :  { %v2776_v20 = vadd.f32 %v2775_v0, %v2774_v62  ;;  %v2799_v12 = vpop.xlane.xlu1 %2798 }
 0x95b   :  { %v2789_v10 = vadd.f32 %v2788_v63, %v2787_v61  ;;  %v2818_v11 = vpop.xlane.xlu0 %2817  ;;  %v2800_v14 = vsel %vm2761_vm1, %v2799_v12, 0.0 }
 0x95c   :  { %v2819_v13 = vmul.f32 -0.5, %v2818_v11  ;;  %v2777_v56 = vrot.slane %v2776_v20, 2  ;;  %v2801_v8 = vrot.slane %v2800_v14, 4 }
 0x95d   :  { %v2790_v15 = vrot.slane %v2789_v10, 2 }
 0x95e   :  { %v2820_v28 = vsel %vm2761_vm1, %v2819_v13, 0.0  ;;  %v2778_v57 = vadd.f32 %v2777_v56, %v2776_v20  ;;  %v2802_v9 = vadd.f32 %v2801_v8, %v2800_v14  ;;  %v1305_v18 = vpop.permute.xlu1 %1304 }
 0x95f   :  { %v2791_v17 = vadd.f32 %v2790_v15, %v2789_v10  ;;  %v2821_v30 = vrot.slane %v2820_v28, 4  ;;  %v1308_v19 = vsel %vm1307_vm14, %v3725_v7, %v1305_v18 }
 0x960   :  { %v2779_v22 = vrot.slane %v2778_v57, 1  ;;  %v2803_v24 = vrot.slane %v2802_v9, 2  ;;  %1310 = vst.msk [vmem:[%s3555_s30] sm:$0x3] %vm1309_vm2, %v1308_v19 }
 0x961   :  { %v2792_v21 = vrot.slane %v2791_v17, 1  ;;  %v2822_v23 = vadd.f32 %v2821_v30, %v2820_v28 }
 0x962   :  { %v2780_v26 = vadd.f32 %v2779_v22, %v2778_v57  ;;  %v2804_v31 = vadd.f32 %v2803_v24, %v2802_v9 }
 0x963   :  { %v2823_v27 = vrot.slane %v2822_v23, 2  ;;  %v2793_v29 = vadd.f32 %v2792_v21, %v2791_v17 }
 0x964   :  { %v2781_v32 = vadd.f32 %v2780_v26, %v2768_v25  ;;  %v2805_v34 = vrot.slane %v2804_v31, 1 }
 0x965   :  { %v2824_v33 = vadd.f32 %v2823_v27, %v2822_v23 }
 0x966   :  { %v2794_v36 = vadd.f32 %v2793_v29, %v2781_v32  ;;  %v2806_v1 = vadd.f32 %v2805_v34, %v2804_v31 }
 0x967   :  { %v2825_v35 = vrot.slane %v2824_v33, 1 }
 0x968   :  { %v2807_v38 = vadd.f32 %v2806_v1, %v2794_v36 }
 0x969   :  { %v2826_v37 = vadd.f32 %v2825_v35, %v2824_v33 }
 0x96a   :  { %v2808_v2 = vmul.f32 0.03125, %v2807_v38 }
 0x96b   :  { %v2827_v7 = vmul.f32 0.03125, %v2826_v37 }
 0x96d   :  { %v2828_v39 = vsel %vm1424_vm12, %v2808_v2, %v2827_v7 }
 0x96e   :  { %2830 = vst.msk [vmem:[%s3540_s12] sm:$0x1] %vm2829_vm3, %v2828_v39 }
 0x96f   :  { %3349 = dma.done.wait [#allocation3], 32  }
 0x970   :  { %3350 = vsyncadd [#allocation3], 4294967264 }
 0x971   :  { %3351 = dma.done.wait [#allocation5], 96  }
 0x972   :  { %3352 = vsyncadd [#allocation5], 4294967200 }
 0x973   :  { %2867 = vsyncpa [#allocation3], 1 }
 0x974   :  { %2868 = vsyncpa [#allocation5], 1 }

</bundles_post_ra>
